<compile_context>
chip_gen: v7x
topology: tpu7x:2x2x1
jax: 0.10.0
libtpu: 0.0.40
codegen_flags: <defaults>
</compile_context>

<pallas_src>
import math

import jax
import jax.numpy as jnp
from jax.experimental import pallas as pl
from jax.experimental.pallas import tpu as pltpu


def _char_kernel(x_ref, w1_ref, rsel_ref, csel_ref, bd_ref, out_ref):
    # x_ref   : (BT, NE*F) bf16  BT batch elements, stimuli flattened row-major
    # w1_ref  : (NE*F, NE) bf16  block-diag stimulus weight diff: w1[n*F+f, n] = wd[f]
    # rsel_ref: (NE, 36)   f32   epoch-average + row-score selection (resident)
    # csel_ref: (NE, 36)   f32   epoch-average + column-score selection (resident)
    # bd_ref  : (1,)       f32   b[1] - b[0] (SMEM scalar)
    # out_ref : (BT, 36)   f32
    bd = bd_ref[0]

    # One tall matmul: (BT, NE*F) @ (NE*F, NE) -> (BT, NE) logit differences,
    # bf16 in / f32 accumulate.  NE sits on the lane axis -> lane-dense epilogue.
    z = jnp.dot(x_ref[...], w1_ref[...], preferred_element_type=jnp.float32)

    # softmax(logits, axis=1)[:, 1] == sigmoid(l1 - l0); divide on the EUP.
    p1 = pl.reciprocal(1.0 + jnp.exp(-(z + bd)), approx=True)          # (BT, NE)

    # Epoch mean + row/column broadcast folded into constant matrices:
    #   r[b, m] = mean_score[b, 6 + m//6]   (row score)
    #   c[b, m] = mean_score[b, m %  6]     (column score)
    r = jnp.dot(p1, rsel_ref[...], preferred_element_type=jnp.float32)  # (BT, 36)
    c = jnp.dot(p1, csel_ref[...], preferred_element_type=jnp.float32)  # (BT, 36)

    out_ref[...] = (r * c).astype(out_ref.dtype)


def _pick_bt(batch, row_bytes):
    """Batch-block size.

    Target ~6 MiB per (double-buffered) x block so the ~0.35 us per-step overhead
    is amortized, while 2 x block + resident weights stay well under v7x's 64 MiB
    VMEM.  Small batches run as a single block; larger batches use an even number
    of near-equal blocks so v7x's two TensorCores stay balanced.
    """
    target_block_bytes = 6 * 1024 * 1024
    bt_max = max(8, min(1024, (target_block_bytes // max(1, row_bytes)) // 8 * 8))
    if batch <= bt_max:
        return batch                      # one block; block dim == full array dim
    n_blocks = -(-batch // bt_max)
    if n_blocks % 2:
        n_blocks += 1                     # even split for v7x's two TensorCores
    bt = -(-batch // n_blocks)
    return max(8, -(-bt // 8) * 8)        # sublane multiple (ragged last block OK)


@jax.jit
def char_classifier_forward(x, w, b):
    """x: (B, 12, E, C, S) (bf16 or f32) -> (B, 36) float32."""
    B, RC, E, C, S = x.shape
    assert RC == 12
    NE = RC * E          # stimuli per batch element
    F = C * S            # features per stimulus
    NEF = NE * F

    # Free row-major view, matching torch.flatten(0,2) + per-stimulus flatten.
    x2 = x.reshape(B, NEF)
    if x2.dtype != jnp.bfloat16:
        x2 = x2.astype(jnp.bfloat16)      # kernel is HBM-bound; stream bf16

    # Collapse the 2-class head: softmax(l)[:, 1] == sigmoid(l1 - l0).
    wd = (w[:, 1] - w[:, 0]).astype(jnp.float32)               # (F,)  diff in f32
    bd = (b[1] - b[0]).reshape(1).astype(jnp.float32)          # (1,)  SMEM scalar

    # Block-diagonal expansion so the logits come out as a lane-dense (BT, NE)
    # array straight from the MXU: w1[n*F + f, n] = wd[f].
    eye = jnp.eye(NE, dtype=jnp.float32)
    w1 = (eye[:, None, :] * wd[None, :, None]).reshape(NEF, NE).astype(jnp.bfloat16)

    # Epoch-averaging (group n -> n // E) folded with the row/column selection of
    # the 6x6 outer product:  out[b, m] = means[b, 6 + m//6] * means[b, m % 6].
    grp = jnp.arange(NE) // E
    avg_t = jax.nn.one_hot(grp, 12, dtype=jnp.float32) / E     # (NE, 12)
    m = jnp.arange(36)
    arow = (jnp.arange(12)[:, None] == (6 + m[None, :] // 6)).astype(jnp.float32)
    acol = (jnp.arange(12)[:, None] == (m[None, :] % 6)).astype(jnp.float32)
    rsel = avg_t @ arow                                         # (NE, 36)
    csel = avg_t @ acol                                         # (NE, 36)

    BT = _pick_bt(B, NEF * 2)
    n_blocks = pl.cdiv(B, BT)
    # Ragged final block: its padding rows hold undefined data; their (possibly
    # inf/nan) results are never written back to HBM by the pipeline.

    out = pl.pallas_call(
        _char_kernel,
        out_shape=jax.ShapeDtypeStruct((B, 36), jnp.float32),
        grid_spec=pltpu.PrefetchScalarGridSpec(
            num_scalar_prefetch=0,
            grid=(n_blocks,),
            in_specs=[
                pl.BlockSpec((BT, NEF), lambda i: (i, 0)),       # streamed input
                pl.BlockSpec((NEF, NE), lambda i: (0, 0)),       # resident weight
                pl.BlockSpec((NE, 36), lambda i: (0, 0)),        # resident const
                pl.BlockSpec((NE, 36), lambda i: (0, 0)),        # resident const
                pl.BlockSpec(memory_space=pltpu.MemorySpace.SMEM),
            ],
            out_specs=pl.BlockSpec((BT, 36), lambda i: (i, 0)),
        ),
        compiler_params=pltpu.CompilerParams(
            dimension_semantics=("parallel",),       # batch blocks are independent
            vmem_limit_bytes=40 * 1024 * 1024,       # 2x ~6 MiB x-block + weights,
                                                     # fits v7x 64 MiB; lifts v5e 16 MiB default
        ),
    )(x2, w1, rsel, csel, bd)

    return out


def _reference_forward(x, w, b):
    """Pure-JAX f32 reference mirroring the PyTorch module semantics."""
    B, RC, E, C, S = x.shape
    xf = x.astype(jnp.float32).reshape(B * RC * E, C * S)
    logits = xf @ w.astype(jnp.float32) + b.reshape(1, 2).astype(jnp.float32)
    p1 = jax.nn.softmax(logits, axis=1)[:, 1]
    scores = p1.reshape(B, 12, E).mean(axis=2)
    col = scores[:, :6].reshape(B, 1, 6)
    row = scores[:, 6:].reshape(B, 6, 1)
    out = jnp.einsum("bik,bkj->bij", row, col)
    return out.reshape(B, 36)


if __name__ == "__main__":
    # (batch, row_column, epoch, channel, sample)
    B, RC, E, C, S = 2, 12, 8, 4, 16

    key = jax.random.PRNGKey(0)
    kx, kw, kb = jax.random.split(key, 3)

    # Activations arrive in bf16: the kernel streams them as-is (no extra cast pass).
    x = jax.random.normal(kx, (B, RC, E, C, S), dtype=jnp.bfloat16)

    # Deterministic synthetic StimulusClassifier params: Linear(C*S -> 2), f32.
    F = C * S
    w = jax.random.normal(kw, (F, 2), dtype=jnp.float32) / math.sqrt(F)
    b = jax.random.normal(kb, (2,), dtype=jnp.float32) * 0.01

    out = char_classifier_forward(x, w, b)
    out = jax.block_until_ready(out)

    ref = _reference_forward(x, w, b)
    assert out.shape == (B, 36)
    # Diffs vs. the f32 reference: bf16 x / w_diff rounding and the approx reciprocal.
    assert jnp.allclose(out, ref, rtol=2e-2, atol=2e-3), "mismatch vs reference"

    print("KERNEL_OK")
</pallas_src>

<mosaic_0001>
module attributes {stable_mosaic.version = 11 : i64} {
  func.func @_char_kernel(%arg0: i32, %arg1: memref<2x6144xbf16, #tpu.memory_space<vmem>>, %arg2: memref<6144x96xbf16, #tpu.memory_space<vmem>>, %arg3: memref<96x36xf32, #tpu.memory_space<vmem>>, %arg4: memref<96x36xf32, #tpu.memory_space<vmem>>, %arg5: memref<1xf32, #tpu.memory_space<smem>>, %arg6: memref<2x36xf32, #tpu.memory_space<vmem>>) attributes {dimension_semantics = [#tpu.dimension_semantics<parallel>], iteration_bounds = array<i64: 1>, scalar_prefetch = 0 : i64, scratch_operands = 0 : i64, tpu.core_type = #tpu.core_type<tc>, window_params = [{transform_indices = @transform_0, window_bounds = array<i64: 2, 6144>}, {pipeline_mode = #tpu.pipeline_mode<synchronous>, transform_indices = @transform_1, window_bounds = array<i64: 6144, 96>}, {pipeline_mode = #tpu.pipeline_mode<synchronous>, transform_indices = @transform_2, window_bounds = array<i64: 96, 36>}, {pipeline_mode = #tpu.pipeline_mode<synchronous>, transform_indices = @transform_3, window_bounds = array<i64: 96, 36>}, {transform_indices = @transform_4, window_bounds = array<i64: 1>}, {transform_indices = @transform_5, window_bounds = array<i64: 2, 36>}]} {
    %c0 = arith.constant 0 : index
    %0 = memref.load %arg5[%c0] : memref<1xf32, #tpu.memory_space<smem>>
    %c0_0 = arith.constant 0 : index
    %c0_1 = arith.constant 0 : index
    %1 = vector.load %arg1[%c0_0, %c0_1] : memref<2x6144xbf16, #tpu.memory_space<vmem>>, vector<2x6144xbf16>
    %c0_2 = arith.constant 0 : index
    %c0_3 = arith.constant 0 : index
    %2 = vector.load %arg2[%c0_2, %c0_3] : memref<6144x96xbf16, #tpu.memory_space<vmem>>, vector<6144x96xbf16>
    %cst = arith.constant dense<0.000000e+00> : vector<2x96xf32>
    %3 = tpu.matmul %1, %2, %cst {dimension_numbers = #tpu.dot_dimension_numbers<[1], [0], [0], [1], [0, 0, 1, 1], [], []>} : vector<2x6144xbf16>, vector<6144x96xbf16>, vector<2x96xf32> -> vector<2x96xf32>
    %4 = vector.broadcast %0 : f32 to vector<2x96xf32>
    %5 = arith.addf %3, %4 : vector<2x96xf32>
    %cst_4 = arith.constant 0.000000e+00 : f32
    %6 = vector.broadcast %cst_4 : f32 to vector<2x96xf32>
    %7 = arith.subf %6, %5 : vector<2x96xf32>
    %8 = math.exp %7 : vector<2x96xf32>
    %cst_5 = arith.constant 1.000000e+00 : f32
    %9 = vector.broadcast %cst_5 : f32 to vector<2x96xf32>
    %10 = arith.addf %9, %8 : vector<2x96xf32>
    %11 = tpu.reciprocal %10 {approx = true} : vector<2x96xf32> -> vector<2x96xf32>
    %c0_6 = arith.constant 0 : index
    %c0_7 = arith.constant 0 : index
    %12 = vector.load %arg3[%c0_6, %c0_7] : memref<96x36xf32, #tpu.memory_space<vmem>>, vector<96x36xf32>
    %cst_8 = arith.constant dense<0.000000e+00> : vector<2x36xf32>
    %13 = tpu.matmul %11, %12, %cst_8 {dimension_numbers = #tpu.dot_dimension_numbers<[1], [0], [0], [1], [0, 0, 1, 1], [], []>} : vector<2x96xf32>, vector<96x36xf32>, vector<2x36xf32> -> vector<2x36xf32>
    %c0_9 = arith.constant 0 : index
    %c0_10 = arith.constant 0 : index
    %14 = vector.load %arg4[%c0_9, %c0_10] : memref<96x36xf32, #tpu.memory_space<vmem>>, vector<96x36xf32>
    %cst_11 = arith.constant dense<0.000000e+00> : vector<2x36xf32>
    %15 = tpu.matmul %11, %14, %cst_11 {dimension_numbers = #tpu.dot_dimension_numbers<[1], [0], [0], [1], [0, 0, 1, 1], [], []>} : vector<2x96xf32>, vector<96x36xf32>, vector<2x36xf32> -> vector<2x36xf32>
    %16 = arith.mulf %13, %15 : vector<2x36xf32>
    %c0_12 = arith.constant 0 : index
    %c0_13 = arith.constant 0 : index
    %17 = vector.load %arg6[%c0_12, %c0_13] : memref<2x36xf32, #tpu.memory_space<vmem>>, vector<2x36xf32>
    tpu.vector_store %arg6[%c0_12, %c0_13], %16 {strides = array<i32>} : memref<2x36xf32, #tpu.memory_space<vmem>>, vector<2x36xf32>,
    return
  }
  func.func @transform_0(%arg0: i32) -> (i32, i32) {
    %c0_i32 = arith.constant 0 : i32
    %c0_i32_0 = arith.constant 0 : i32
    return %arg0, %c0_i32 : i32, i32
  }
  func.func @transform_1(%arg0: i32) -> (i32, i32) {
    %c0_i32 = arith.constant 0 : i32
    %c0_i32_0 = arith.constant 0 : i32
    %c0_i32_1 = arith.constant 0 : i32
    return %c0_i32, %c0_i32_0 : i32, i32
  }
  func.func @transform_2(%arg0: i32) -> (i32, i32) {
    %c0_i32 = arith.constant 0 : i32
    %c0_i32_0 = arith.constant 0 : i32
    %c0_i32_1 = arith.constant 0 : i32
    return %c0_i32, %c0_i32_0 : i32, i32
  }
  func.func @transform_3(%arg0: i32) -> (i32, i32) {
    %c0_i32 = arith.constant 0 : i32
    %c0_i32_0 = arith.constant 0 : i32
    %c0_i32_1 = arith.constant 0 : i32
    return %c0_i32, %c0_i32_0 : i32, i32
  }
  func.func @transform_4(%arg0: i32) -> i32 {
    %c0_i32 = arith.constant 0 : i32
    %c0_i32_0 = arith.constant 0 : i32
    return %c0_i32 : i32
  }
  func.func @transform_5(%arg0: i32) -> (i32, i32) {
    %c0_i32 = arith.constant 0 : i32
    %c0_i32_0 = arith.constant 0 : i32
    return %arg0, %c0_i32 : i32, i32
  }
}

</mosaic_0001>

<bundles_post_ra>
// kernel: char_classifier_forward.1
= control target key start
LH: loop header
LB: loop body
LE: loop exit
PB: predicated region body
PF: predicated region fallthrough
CT: control target
= control target key end

     0   :  { %v809_v28 = vlaneseq  ;;  %v6054_v36 = vmov 1966171168   ;;  %s7429_s0 = inlined_call_operand.vmem [shape: bf16[2,6144], index: 0, kind: input, shape index: {}]   ;;  %s7430_s1 = inlined_call_operand.vmem [shape: bf16[6144,96], index: 1, kind: input, shape index: {}]   ;;  %s7431_s2 = inlined_call_operand.vmem [shape: f32[96,36], index: 2, kind: input, shape index: {}]   ;;  %s7432_s3 = inlined_call_operand.vmem [shape: f32[96,36], index: 3, kind: input, shape index: {}]   ;;  %s7433_s4 = inlined_call_operand.<no memory space> [shape: f32[1], index: 4, kind: input, shape index: {}]   ;;  %s7434_s5 = inlined_call_operand.hbm [shape: f32[2,36], index: 5, kind: output, shape index: {}]  }
   0x1   :  { %v5636_v0 = vld [vmem:[%s7430_s1 + $0x40] sm:$0xff]   ;;  %v5640_v4 = vld [vmem:[%s7430_s1 + $0x48] sm:$0xff]   ;;  %v5644_v8 = vld [vmem:[%s7430_s1 + $0x50] sm:$0xff]   ;;  %v807_v37 = vunpack.c.l.s4 %v6054_v36 }
   0x2   :  { %v5637_v1 = vld [vmem:[%s7430_s1 + $0xc0] sm:$0xff]   ;;  %4987 = vmatprep.subr.bf16.mxu0 %v5636_v0  ;;  %v5641_v5 = vld [vmem:[%s7430_s1 + $0xc8] sm:$0xff]   ;;  %v5645_v9 = vld [vmem:[%s7430_s1 + $0xd0] sm:$0xff]   ;;  %v810_v33 = vshrl.u32 %v809_v28, 7 }
   0x3   :  { %v5638_v2 = vld [vmem:[%s7430_s1] sm:$0xff]   ;;  %5009 = vmatprep.subr.bf16.mxu1 %v5637_v1  ;;  %v5642_v6 = vld [vmem:[%s7430_s1 + $0x8] sm:$0xff]   ;;  %v5646_v10 = vld [vmem:[%s7430_s1 + $0x10] sm:$0xff]   ;;  %v808_v40 = vunpack.c.0.s8 %v807_v37 }
   0x4   :  { %v5639_v3 = vld [vmem:[%s7430_s1 + $0x80] sm:$0xff]   ;;  %4988 = vmatpush3.bf16.msra.mxu0 %v5638_v2  ;;  %v5643_v7 = vld [vmem:[%s7430_s1 + $0x88] sm:$0xff]   ;;  %v5647_v11 = vld [vmem:[%s7430_s1 + $0x90] sm:$0xff]  }
   0x5   :  { %5010 = vmatpush3.bf16.msra.mxu1 %v5639_v3  ;;  %4989 = vmatprep.subr.bf16.mxu0 %v5640_v4  ;;  %v5648_v12 = vld [vmem:[%s7430_s1 + $0x58] sm:$0xff]   ;;  %v5652_v16 = vld [vmem:[%s7430_s1 + $0x60] sm:$0xff]   ;;  %v5656_v20 = vld [vmem:[%s7430_s1 + $0x68] sm:$0xff]   ;;  %v6194_v41 = vsub.s32 %v808_v40, %v810_v33 }
   0x6   :  { %5011 = vmatprep.subr.bf16.mxu1 %v5641_v5  ;;  %v5649_v13 = vld [vmem:[%s7430_s1 + $0xd8] sm:$0xff]   ;;  %v5653_v17 = vld [vmem:[%s7430_s1 + $0xe0] sm:$0xff]   ;;  %v5657_v21 = vld [vmem:[%s7430_s1 + $0xe8] sm:$0xff]  }
   0x7   :  { %v5650_v14 = vld [vmem:[%s7430_s1 + $0x18] sm:$0xff]   ;;  %v5654_v18 = vld [vmem:[%s7430_s1 + $0x20] sm:$0xff]   ;;  %v5658_v22 = vld [vmem:[%s7430_s1 + $0x28] sm:$0xff]  }
   0x8   :  { %4990 = vmatpush3.bf16.msra.mxu0 %v5642_v6  ;;  %v5651_v15 = vld [vmem:[%s7430_s1 + $0x98] sm:$0xff]   ;;  %v5655_v19 = vld [vmem:[%s7430_s1 + $0xa0] sm:$0xff]   ;;  %v5659_v23 = vld [vmem:[%s7430_s1 + $0xa8] sm:$0xff]  }
   0x9   :  { %5012 = vmatpush3.bf16.msra.mxu1 %v5643_v7  ;;  %4991 = vmatprep.subr.bf16.mxu0 %v5644_v8  ;;  %v5660_v24 = vld [vmem:[%s7430_s1 + $0x70] sm:$0xff]   ;;  %v5664_v29 = vld [vmem:[%s7430_s1 + $0x78] sm:$0xff]   ;;  %v24_v34 = vld [vmem:[%s7429_s0] sm:$0xff] }
   0xa   :  { %5013 = vmatprep.subr.bf16.mxu1 %v5645_v9  ;;  %v5661_v25 = vld [vmem:[%s7430_s1 + $0xf0] sm:$0xff]   ;;  %v5665_v30 = vld [vmem:[%s7430_s1 + $0xf8] sm:$0xff]   ;;  %v5669_v35 = vld [vmem:[%s7430_s1 + $0x140] sm:$0xff]   ;;  %v805_v39 = vcombine.high %v24_v34, %v24_v34  ;;  %v812_v42 = vrot.slane %v24_v34, %v6194_v41 }
   0xb   :  { %v5662_v26 = vld [vmem:[%s7430_s1 + $0x30] sm:$0xff]   ;;  %v5666_v31 = vld [vmem:[%s7430_s1 + $0x38] sm:$0xff]   ;;  %v5670_v38 = vld [vmem:[%s7430_s1 + $0x1c0] sm:$0xff]  }
   0xc   :  { %4992 = vmatpush3.bf16.msra.mxu0 %v5646_v10  ;;  %v5663_v27 = vld [vmem:[%s7430_s1 + $0xb0] sm:$0xff]   ;;  %v5667_v32 = vld [vmem:[%s7430_s1 + $0xb8] sm:$0xff]   ;;  %v6198_v43 = vrot.slane %v805_v39, %v6194_v41  ;;  %v820_v44 = vcombine.high %v812_v42, %v812_v42  ;;  %v828_v45 = vrot.slane %v812_v42, %v6194_v41  ;;  %v5671_v47 = vld [vmem:[%s7430_s1 + $0x100] sm:$0xff]  }
   0xd   :  { %5014 = vmatpush3.bf16.msra.mxu1 %v5647_v11  ;;  %4993 = vmatprep.subr.bf16.mxu0 %v5648_v12  ;;  %v5672_v49 = vld [vmem:[%s7430_s1 + $0x180] sm:$0xff]   ;;  %v5673_v52 = vld [vmem:[%s7430_s1 + $0x148] sm:$0xff]   ;;  %v5677_v58 = vld [vmem:[%s7430_s1 + $0x150] sm:$0xff]  }
   0xe   :  { %5015 = vmatprep.subr.bf16.mxu1 %v5649_v13  ;;  %v821_v46 = vcombine.high %v6198_v43, %v6198_v43  ;;  %v842_v48 = vrot.slane %v820_v44, %v6194_v41  ;;  %v850_v51 = vcombine.high %v828_v45, %v828_v45  ;;  %v5674_v54 = vld [vmem:[%s7430_s1 + $0x1c8] sm:$0xff]   ;;  %v5678_v59 = vld [vmem:[%s7430_s1 + $0x1d0] sm:$0xff]   ;;  %v5681_v62 = vld [vmem:[%s7430_s1 + $0x158] sm:$0xff]  }
   0xf   :  { %v5675_v55 = vld [vmem:[%s7430_s1 + $0x108] sm:$0xff]   ;;  %v5679_v60 = vld [vmem:[%s7430_s1 + $0x110] sm:$0xff]   ;;  %v5682_v63 = vld [vmem:[%s7430_s1 + $0x1d8] sm:$0xff]  }
  0x10   :  { %4994 = vmatpush3.bf16.msra.mxu0 %v5650_v14  ;;  %v849_v50 = vrot.slane %v821_v46, %v6194_v41  ;;  %3483 = vmatprep.mubr.bf16.mxu0 %v842_v48  ;;  %v852_v53 = vcombine.high %v842_v48, %v842_v48  ;;  %v5676_v57 = vld [vmem:[%s7430_s1 + $0x188] sm:$0xff]   ;;  %v5680_v61 = vld [vmem:[%s7430_s1 + $0x190] sm:$0xff]   ;;  %v5683_v0 = vld [vmem:[%s7430_s1 + $0x118] sm:$0xff]  }
  0x11   :  { %5016 = vmatpush3.bf16.msra.mxu1 %v5651_v15  ;;  %4995 = vmatprep.subr.bf16.mxu0 %v5652_v16  ;;  %v5684_v1 = vld [vmem:[%s7430_s1 + $0x198] sm:$0xff]   ;;  %v5685_v2 = vld [vmem:[%s7430_s1 + $0x160] sm:$0xff]   ;;  %v5689_v6 = vld [vmem:[%s7430_s1 + $0x168] sm:$0xff]  }
  0x12   :  { %5017 = vmatprep.subr.bf16.mxu1 %v5653_v17  ;;  %v853_v56 = vcombine.high %v849_v50, %v849_v50  ;;  %3523 = vmatprep.mubr.bf16.mxu1 %v852_v53  ;;  %v5686_v3 = vld [vmem:[%s7430_s1 + $0x1e0] sm:$0xff]   ;;  %v5690_v7 = vld [vmem:[%s7430_s1 + $0x1e8] sm:$0xff]   ;;  %v5693_v10 = vld [vmem:[%s7430_s1 + $0x170] sm:$0xff]  }
  0x13   :  { %v5687_v4 = vld [vmem:[%s7430_s1 + $0x120] sm:$0xff]   ;;  %v5691_v8 = vld [vmem:[%s7430_s1 + $0x128] sm:$0xff]   ;;  %v5694_v11 = vld [vmem:[%s7430_s1 + $0x1f0] sm:$0xff]  }
  0x14   :  { %4996 = vmatpush3.bf16.msra.mxu0 %v5654_v18  ;;  %v5688_v5 = vld [vmem:[%s7430_s1 + $0x1a0] sm:$0xff]   ;;  %v5692_v9 = vld [vmem:[%s7430_s1 + $0x1a8] sm:$0xff]   ;;  %v5695_v12 = vld [vmem:[%s7430_s1 + $0x130] sm:$0xff]   ;;  %v835_v18 = vrot.slane %v6198_v43, %v6194_v41 }
  0x15   :  { %5018 = vmatpush3.bf16.msra.mxu1 %v5655_v19  ;;  %4997 = vmatprep.subr.bf16.mxu0 %v5656_v20  ;;  %v5696_v13 = vld [vmem:[%s7430_s1 + $0x1b0] sm:$0xff]   ;;  %v5697_v14 = vld [vmem:[%s7430_s1 + $0x178] sm:$0xff]   ;;  %v5701_v19 = vld [vmem:[%s7430_s1 + $0x240] sm:$0xff]  }
  0x16   :  { %5019 = vmatprep.subr.bf16.mxu1 %v5657_v21  ;;  %v5698_v15 = vld [vmem:[%s7430_s1 + $0x1f8] sm:$0xff]   ;;  %v5702_v20 = vld [vmem:[%s7430_s1 + $0x2c0] sm:$0xff]   ;;  %v5709_v28 = vld [vmem:[%s7430_s1 + $0x250] sm:$0xff]  }
  0x17   :  { %v5699_v16 = vld [vmem:[%s7430_s1 + $0x138] sm:$0xff]   ;;  %v5703_v21 = vld [vmem:[%s7430_s1 + $0x200] sm:$0xff]   ;;  %v5721_v40 = vld [vmem:[%s7430_s1 + $0x268] sm:$0xff]  }
  0x18   :  { %4998 = vmatpush3.bf16.msra.mxu0 %v5658_v22  ;;  %v5700_v17 = vld [vmem:[%s7430_s1 + $0x1b8] sm:$0xff]   ;;  %v5704_v22 = vld [vmem:[%s7430_s1 + $0x280] sm:$0xff]   ;;  %v5722_v42 = vld [vmem:[%s7430_s1 + $0x2e8] sm:$0xff]  }
  0x19   :  { %5020 = vmatpush3.bf16.msra.mxu1 %v5659_v23  ;;  %4999 = vmatprep.subr.bf16.mxu0 %v5660_v24  ;;  %v851_v23 = vcombine.high %v835_v18, %v835_v18  ;;  %v5705_v24 = vld [vmem:[%s7430_s1 + $0x248] sm:$0xff]   ;;  %v5714_v33 = vld [vmem:[%s7430_s1 + $0x2d8] sm:$0xff]   ;;  %v5717_v36 = vld [vmem:[%s7430_s1 + $0x260] sm:$0xff]  }
  0x1a   :  { %5021 = vmatprep.subr.bf16.mxu1 %v5661_v25  ;;  %v5706_v25 = vld [vmem:[%s7430_s1 + $0x2c8] sm:$0xff]   ;;  %v5715_v34 = vld [vmem:[%s7430_s1 + $0x218] sm:$0xff]   ;;  %v5718_v37 = vld [vmem:[%s7430_s1 + $0x2e0] sm:$0xff]  }
  0x1b   :  { %v5720_v39 = vld [vmem:[%s7430_s1 + $0x2a0] sm:$0xff]   ;;  %v5723_v43 = vld [vmem:[%s7430_s1 + $0x228] sm:$0xff]  }
  0x1c   :  { %5000 = vmatpush3.bf16.msra.mxu0 %v5662_v26  ;;  %v5707_v26 = vld [vmem:[%s7430_s1 + $0x208] sm:$0xff]  }
  0x1d   :  { %5022 = vmatpush3.bf16.msra.mxu1 %v5663_v27  ;;  %5001 = vmatprep.subr.bf16.mxu0 %v5664_v29  ;;  %v5708_v27 = vld [vmem:[%s7430_s1 + $0x288] sm:$0xff]   ;;  %v5710_v29 = vld [vmem:[%s7430_s1 + $0x2d0] sm:$0xff]  }
  0x1e   :  { %5023 = vmatprep.subr.bf16.mxu1 %v5665_v30  ;;  %v5711_v30 = vld [vmem:[%s7430_s1 + $0x210] sm:$0xff]   ;;  %v5724_v44 = vld [vmem:[%s7430_s1 + $0x2a8] sm:$0xff]  }
  0x1f   :  { %v25_v46 = vld [vmem:[%s7429_s0 + $0x8] sm:$0xff] }
  0x20   :  { %5002 = vmatpush3.bf16.msra.mxu0 %v5666_v31  ;;  %v5712_v31 = vld [vmem:[%s7430_s1 + $0x290] sm:$0xff]   ;;  %v861_v48 = vrot.slane %v25_v46, %v6194_v41 }
  0x21   :  { %5024 = vmatpush3.bf16.msra.mxu1 %v5667_v32  ;;  %5031 = vmatprep.subr.bf16.mxu0 %v5669_v35  ;;  %v5713_v32 = vld [vmem:[%s7430_s1 + $0x258] sm:$0xff]  }
  0x22   :  { %5053 = vmatprep.subr.bf16.mxu1 %v5670_v38  ;;  %v5716_v35 = vld [vmem:[%s7430_s1 + $0x298] sm:$0xff]   ;;  %v5719_v38 = vld [vmem:[%s7430_s1 + $0x220] sm:$0xff]  }
  0x23   :  { %3484 = vmatmul.mubr.bf16.vlgmr.msra.gmra.mrb[0].mxu0 %v828_v45  ;;  %v5725_v45 = vld [vmem:[%s7430_s1 + $0x270] sm:$0xff]  }
  0x24   :  { %5032 = vmatpush3.bf16.msra.mxu0 %v5671_v47  ;;  %3524 = vmatmul.mubr.bf16.vlgmr.msra.gmra.mrb[0].mxu1 %v850_v51  ;;  %v5726_v47 = vld [vmem:[%s7430_s1 + $0x2f0] sm:$0xff]  }
  0x25   :  { %5033 = vmatprep.subr.bf16.mxu0 %v5673_v52  ;;  %5054 = vmatpush3.bf16.msra.mxu1 %v5672_v49  ;;  %v854_v49 = vcombine.high %v25_v46, %v25_v46  ;;  %v5728_v51 = vld [vmem:[%s7430_s1 + $0x2b0] sm:$0xff]   ;;  %v869_v52 = vcombine.high %v861_v48, %v861_v48 }
  0x26   :  { %3563 = vmatprep.mubr.bf16.mxu0 %v849_v50  ;;  %5055 = vmatprep.subr.bf16.mxu1 %v5674_v54  ;;  %v5727_v50 = vld [vmem:[%s7430_s1 + $0x230] sm:$0xff]   ;;  %v5729_v54 = vld [vmem:[%s7430_s1 + $0x278] sm:$0xff]  }
  0x27   :  { %3603 = vmatprep.mubr.bf16.mxu1 %v853_v56  ;;  %v6386_v53 = vrot.slane %v854_v49, %v6194_v41  ;;  %v891_v56 = vrot.slane %v869_v52, %v6194_v41  ;;  %v5776_v46 = vld [vmem:[%s7430_s1 + $0x410] sm:$0xff]   ;;  %v5779_v49 = vld [vmem:[%s7430_s1 + $0x4d8] sm:$0xff]   ;;  %v5782_v52 = vld [vmem:[%s7430_s1 + $0x460] sm:$0xff]  }
  0x28   :  { %5034 = vmatpush3.bf16.msra.mxu0 %v5675_v55  ;;  %v5730_v55 = vld [vmem:[%s7430_s1 + $0x2f8] sm:$0xff]  }
  0x29   :  { %5035 = vmatprep.subr.bf16.mxu0 %v5677_v58  ;;  %5056 = vmatpush3.bf16.msra.mxu1 %v5676_v57  ;;  %v870_v57 = vcombine.high %v6386_v53, %v6386_v53  ;;  %v5731_v58 = vld [vmem:[%s7430_s1 + $0x238] sm:$0xff]  }
  0x2a   :  { %5057 = vmatprep.subr.bf16.mxu1 %v5678_v59  ;;  %v5732_v59 = vld [vmem:[%s7430_s1 + $0x2b8] sm:$0xff]  }
  0x2c   :  { %5036 = vmatpush3.bf16.msra.mxu0 %v5679_v60  ;;  %v901_v60 = vcombine.high %v891_v56, %v891_v56 }
  0x2d   :  { %5037 = vmatprep.subr.bf16.mxu0 %v5681_v62  ;;  %5058 = vmatpush3.bf16.msra.mxu1 %v5680_v61  ;;  %v877_v61 = vrot.slane %v861_v48, %v6194_v41  ;;  %v5733_v62 = vld [vmem:[%s7430_s1 + $0x340] sm:$0xff]   ;;  %v5778_v48 = vld [vmem:[%s7430_s1 + $0x458] sm:$0xff]  }
  0x2e   :  { %5059 = vmatprep.subr.bf16.mxu1 %v5682_v63  ;;  %v5734_v63 = vld [vmem:[%s7430_s1 + $0x3c0] sm:$0xff]  }
  0x30   :  { %5038 = vmatpush3.bf16.msra.mxu0 %v5683_v0  ;;  %v898_v0 = vrot.slane %v870_v57, %v6194_v41  ;;  %v5787_v57 = vld [vmem:[%s7430_s1 + $0x4e8] sm:$0xff]  }
  0x31   :  { %5039 = vmatprep.subr.bf16.mxu0 %v5685_v2  ;;  %5060 = vmatpush3.bf16.msra.mxu1 %v5684_v1  ;;  %v5735_v1 = vld [vmem:[%s7430_s1 + $0x300] sm:$0xff]  }
  0x32   :  { %5061 = vmatprep.subr.bf16.mxu1 %v5686_v3  ;;  %v5736_v2 = vld [vmem:[%s7430_s1 + $0x380] sm:$0xff]   ;;  %v899_v3 = vcombine.high %v877_v61, %v877_v61 }
  0x34   :  { %5040 = vmatpush3.bf16.msra.mxu0 %v5687_v4  ;;  %v5737_v4 = vld [vmem:[%s7430_s1 + $0x348] sm:$0xff]  }
  0x35   :  { %5041 = vmatprep.subr.bf16.mxu0 %v5689_v6  ;;  %5062 = vmatpush3.bf16.msra.mxu1 %v5688_v5  ;;  %v5738_v5 = vld [vmem:[%s7430_s1 + $0x3c8] sm:$0xff]   ;;  %v902_v6 = vcombine.high %v898_v0, %v898_v0 }
  0x36   :  { %5063 = vmatprep.subr.bf16.mxu1 %v5690_v7  ;;  %v5739_v7 = vld [vmem:[%s7430_s1 + $0x308] sm:$0xff]  }
  0x38   :  { %5042 = vmatpush3.bf16.msra.mxu0 %v5691_v8  ;;  %v5740_v8 = vld [vmem:[%s7430_s1 + $0x388] sm:$0xff]  }
  0x39   :  { %5043 = vmatprep.subr.bf16.mxu0 %v5693_v10  ;;  %5064 = vmatpush3.bf16.msra.mxu1 %v5692_v9  ;;  %v5741_v9 = vld [vmem:[%s7430_s1 + $0x350] sm:$0xff]  }
  0x3a   :  { %5065 = vmatprep.subr.bf16.mxu1 %v5694_v11  ;;  %v5742_v10 = vld [vmem:[%s7430_s1 + $0x3d0] sm:$0xff]  }
  0x3b   :  { %v5743_v11 = vld [vmem:[%s7430_s1 + $0x310] sm:$0xff]  }
  0x3c   :  { %5044 = vmatpush3.bf16.msra.mxu0 %v5695_v12  ;;  %v5744_v12 = vld [vmem:[%s7430_s1 + $0x390] sm:$0xff]  }
  0x3d   :  { %5045 = vmatprep.subr.bf16.mxu0 %v5697_v14  ;;  %5066 = vmatpush3.bf16.msra.mxu1 %v5696_v13  ;;  %v5745_v13 = vld [vmem:[%s7430_s1 + $0x358] sm:$0xff]  }
  0x3e   :  { %5067 = vmatprep.subr.bf16.mxu1 %v5698_v15  ;;  %v5746_v14 = vld [vmem:[%s7430_s1 + $0x3d8] sm:$0xff]  }
  0x3f   :  { %v5747_v15 = vld [vmem:[%s7430_s1 + $0x318] sm:$0xff]  }
  0x40   :  { %5046 = vmatpush3.bf16.msra.mxu0 %v5699_v16  ;;  %v5748_v16 = vld [vmem:[%s7430_s1 + $0x398] sm:$0xff]  }
  0x41   :  { %5075 = vmatprep.subr.bf16.mxu0 %v5701_v19  ;;  %5068 = vmatpush3.bf16.msra.mxu1 %v5700_v17  ;;  %v5749_v17 = vld [vmem:[%s7430_s1 + $0x360] sm:$0xff]  }
  0x42   :  { %5097 = vmatprep.subr.bf16.mxu1 %v5702_v20  ;;  %v5751_v19 = vld [vmem:[%s7430_s1 + $0x320] sm:$0xff]  }
  0x43   :  { %3564 = vmatmul.mubr.bf16.vlgmr.msra.gmra.mrb[4].mxu0 %v835_v18  ;;  %v5750_v18 = vld [vmem:[%s7430_s1 + $0x3e0] sm:$0xff]  }
  0x44   :  { %5076 = vmatpush3.bf16.msra.mxu0 %v5703_v21  ;;  %3604 = vmatmul.mubr.bf16.vlgmr.msra.gmra.mrb[4].mxu1 %v851_v23  ;;  %v5752_v20 = vld [vmem:[%s7430_s1 + $0x3a0] sm:$0xff]   ;;  %v5753_v21 = vld [vmem:[%s7430_s1 + $0x368] sm:$0xff]  }
  0x45   :  { %5077 = vmatprep.subr.bf16.mxu0 %v5705_v24  ;;  %5098 = vmatpush3.bf16.msra.mxu1 %v5704_v22  ;;  %v5754_v22 = vld [vmem:[%s7430_s1 + $0x3e8] sm:$0xff]  }
  0x46   :  { %5099 = vmatprep.subr.bf16.mxu1 %v5706_v25  ;;  %3643 = vmatprep.mubr.bf16.mxu0 %v891_v56  ;;  %v5755_v23 = vld [vmem:[%s7430_s1 + $0x328] sm:$0xff]   ;;  %v5757_v25 = vld [vmem:[%s7430_s1 + $0x370] sm:$0xff]  }
  0x47   :  { %3683 = vmatprep.mubr.bf16.mxu1 %v901_v60  ;;  %v5756_v24 = vld [vmem:[%s7430_s1 + $0x3a8] sm:$0xff]   ;;  %v5790_v60 = vld [vmem:[%s7430_s1 + $0x470] sm:$0xff]  }
  0x48   :  { %5078 = vmatpush3.bf16.msra.mxu0 %v5707_v26  ;;  %v5758_v26 = vld [vmem:[%s7430_s1 + $0x3f0] sm:$0xff]   ;;  %v5786_v56 = vld [vmem:[%s7430_s1 + $0x468] sm:$0xff]  }
  0x49   :  { %5079 = vmatprep.subr.bf16.mxu0 %v5709_v28  ;;  %5100 = vmatpush3.bf16.msra.mxu1 %v5708_v27  ;;  %v5759_v27 = vld [vmem:[%s7430_s1 + $0x330] sm:$0xff]  }
  0x4a   :  { %5101 = vmatprep.subr.bf16.mxu1 %v5710_v29  ;;  %v5760_v28 = vld [vmem:[%s7430_s1 + $0x3b0] sm:$0xff]   ;;  %v5761_v29 = vld [vmem:[%s7430_s1 + $0x378] sm:$0xff]  }
  0x4c   :  { %5080 = vmatpush3.bf16.msra.mxu0 %v5711_v30  ;;  %v5762_v30 = vld [vmem:[%s7430_s1 + $0x3f8] sm:$0xff]  }
  0x4d   :  { %5081 = vmatprep.subr.bf16.mxu0 %v5713_v32  ;;  %5102 = vmatpush3.bf16.msra.mxu1 %v5712_v31  ;;  %v5763_v31 = vld [vmem:[%s7430_s1 + $0x338] sm:$0xff]  }
  0x4e   :  { %5103 = vmatprep.subr.bf16.mxu1 %v5714_v33  ;;  %v5764_v32 = vld [vmem:[%s7430_s1 + $0x3b8] sm:$0xff]   ;;  %v884_v33 = vrot.slane %v6386_v53, %v6194_v41  ;;  %v5783_v53 = vld [vmem:[%s7430_s1 + $0x4e0] sm:$0xff]  }
  0x50   :  { %5082 = vmatpush3.bf16.msra.mxu0 %v5715_v34  ;;  %v5766_v34 = vld [vmem:[%s7430_s1 + $0x440] sm:$0xff]  }
  0x51   :  { %5083 = vmatprep.subr.bf16.mxu0 %v5717_v36  ;;  %5104 = vmatpush3.bf16.msra.mxu1 %v5716_v35  ;;  %v5767_v35 = vld [vmem:[%s7430_s1 + $0x4c0] sm:$0xff]  }
  0x52   :  { %5105 = vmatprep.subr.bf16.mxu1 %v5718_v37  ;;  %v5768_v36 = vld [vmem:[%s7430_s1 + $0x400] sm:$0xff]  }
  0x53   :  { %v5769_v37 = vld [vmem:[%s7430_s1 + $0x480] sm:$0xff]  }
  0x54   :  { %5084 = vmatpush3.bf16.msra.mxu0 %v5719_v38  ;;  %v900_v38 = vcombine.high %v884_v33, %v884_v33 }
  0x55   :  { %5085 = vmatprep.subr.bf16.mxu0 %v5721_v40  ;;  %5106 = vmatpush3.bf16.msra.mxu1 %v5720_v39  ;;  %v5770_v39 = vld [vmem:[%s7430_s1 + $0x448] sm:$0xff]  }
  0x56   :  { %5107 = vmatprep.subr.bf16.mxu1 %v5722_v42  ;;  %v5771_v40 = vld [vmem:[%s7430_s1 + $0x4c8] sm:$0xff]  }
  0x57   :  { %v5772_v42 = vld [vmem:[%s7430_s1 + $0x408] sm:$0xff]  }
  0x58   :  { %5086 = vmatpush3.bf16.msra.mxu0 %v5723_v43  ;;  %v5773_v43 = vld [vmem:[%s7430_s1 + $0x488] sm:$0xff]  }
  0x59   :  { %5087 = vmatprep.subr.bf16.mxu0 %v5725_v45  ;;  %5108 = vmatpush3.bf16.msra.mxu1 %v5724_v44  ;;  %v5774_v44 = vld [vmem:[%s7430_s1 + $0x450] sm:$0xff]  }
  0x5a   :  { %5109 = vmatprep.subr.bf16.mxu1 %v5726_v47  ;;  %v5775_v45 = vld [vmem:[%s7430_s1 + $0x4d0] sm:$0xff]  }
  0x5b   :  { %v5777_v47 = vld [vmem:[%s7430_s1 + $0x490] sm:$0xff]  }
  0x5c   :  { %5088 = vmatpush3.bf16.msra.mxu0 %v5727_v50  ;;  %v5780_v50 = vld [vmem:[%s7430_s1 + $0x418] sm:$0xff]  }
  0x5d   :  { %5089 = vmatprep.subr.bf16.mxu0 %v5729_v54  ;;  %5110 = vmatpush3.bf16.msra.mxu1 %v5728_v51  ;;  %v5781_v51 = vld [vmem:[%s7430_s1 + $0x498] sm:$0xff]   ;;  %v5784_v54 = vld [vmem:[%s7430_s1 + $0x420] sm:$0xff]  }
  0x5e   :  { %5111 = vmatprep.subr.bf16.mxu1 %v5730_v55  ;;  %v5785_v55 = vld [vmem:[%s7430_s1 + $0x4a0] sm:$0xff]  }
  0x60   :  { %5090 = vmatpush3.bf16.msra.mxu0 %v5731_v58  ;;  %v5788_v58 = vld [vmem:[%s7430_s1 + $0x428] sm:$0xff]  }
  0x61   :  { %5119 = vmatprep.subr.bf16.mxu0 %v5733_v62  ;;  %5112 = vmatpush3.bf16.msra.mxu1 %v5732_v59  ;;  %v5789_v59 = vld [vmem:[%s7430_s1 + $0x4a8] sm:$0xff]   ;;  %v5791_v62 = vld [vmem:[%s7430_s1 + $0x4f0] sm:$0xff]  }
  0x62   :  { %5141 = vmatprep.subr.bf16.mxu1 %v5734_v63 }
  0x63   :  { %3644 = vmatmul.mubr.bf16.vlgmr.msra.gmra.mrb[8].mxu0 %v877_v61  ;;  %v26_v61 = vld [vmem:[%s7429_s0 + $0x10] sm:$0xff] }
  0x64   :  { %5120 = vmatpush3.bf16.msra.mxu0 %v5735_v1  ;;  %3723 = vmatprep.mubr.bf16.mxu0 %v898_v0  ;;  %v910_v63 = vrot.slane %v26_v61, %v6194_v41  ;;  %v903_v0 = vcombine.high %v26_v61, %v26_v61  ;;  %v5792_v1 = vld [vmem:[%s7430_s1 + $0x430] sm:$0xff]  }
  0x65   :  { %3684 = vmatmul.mubr.bf16.vlgmr.msra.gmra.mrb[8].mxu1 %v899_v3  ;;  %5121 = vmatprep.subr.bf16.mxu0 %v5737_v4  ;;  %v5841_v61 = vld [vmem:[%s7430_s1 + $0x610] sm:$0xff]  }
  0x66   :  { %5142 = vmatpush3.bf16.msra.mxu1 %v5736_v2  ;;  %3763 = vmatprep.mubr.bf16.mxu1 %v902_v6  ;;  %v5793_v2 = vld [vmem:[%s7430_s1 + $0x4b0] sm:$0xff]   ;;  %v918_v3 = vcombine.high %v910_v63, %v910_v63  ;;  %v6592_v4 = vrot.slane %v903_v0, %v6194_v41  ;;  %v5795_v6 = vld [vmem:[%s7430_s1 + $0x4f8] sm:$0xff]  }
  0x67   :  { %5143 = vmatprep.subr.bf16.mxu1 %v5738_v5  ;;  %v5794_v5 = vld [vmem:[%s7430_s1 + $0x478] sm:$0xff]  }
  0x68   :  { %5122 = vmatpush3.bf16.msra.mxu0 %v5739_v7  ;;  %v940_v7 = vrot.slane %v918_v3, %v6194_v41  ;;  %v5844_v0 = vld [vmem:[%s7430_s1 + $0x6d8] sm:$0xff]   ;;  %v5847_v3 = vld [vmem:[%s7430_s1 + $0x660] sm:$0xff]  }
  0x69   :  { %5123 = vmatprep.subr.bf16.mxu0 %v5741_v9  ;;  %v5796_v9 = vld [vmem:[%s7430_s1 + $0x438] sm:$0xff]  }
  0x6a   :  { %5144 = vmatpush3.bf16.msra.mxu1 %v5740_v8  ;;  %v919_v8 = vcombine.high %v6592_v4, %v6592_v4 }
  0x6b   :  { %5145 = vmatprep.subr.bf16.mxu1 %v5742_v10  ;;  %v5797_v10 = vld [vmem:[%s7430_s1 + $0x4b8] sm:$0xff]  }
  0x6c   :  { %5124 = vmatpush3.bf16.msra.mxu0 %v5743_v11  ;;  %v950_v11 = vcombine.high %v940_v7, %v940_v7 }
  0x6d   :  { %5125 = vmatprep.subr.bf16.mxu0 %v5745_v13  ;;  %v5798_v13 = vld [vmem:[%s7430_s1 + $0x540] sm:$0xff]  }
  0x6e   :  { %5146 = vmatpush3.bf16.msra.mxu1 %v5744_v12  ;;  %v926_v12 = vrot.slane %v910_v63, %v6194_v41  ;;  %v5843_v63 = vld [vmem:[%s7430_s1 + $0x658] sm:$0xff]  }
  0x6f   :  { %5147 = vmatprep.subr.bf16.mxu1 %v5746_v14  ;;  %v5799_v14 = vld [vmem:[%s7430_s1 + $0x5c0] sm:$0xff]  }
  0x70   :  { %5126 = vmatpush3.bf16.msra.mxu0 %v5747_v15  ;;  %v947_v15 = vrot.slane %v919_v8, %v6194_v41  ;;  %v5852_v8 = vld [vmem:[%s7430_s1 + $0x6e8] sm:$0xff]  }
  0x71   :  { %5127 = vmatprep.subr.bf16.mxu0 %v5749_v17  ;;  %v5801_v17 = vld [vmem:[%s7430_s1 + $0x580] sm:$0xff]  }
  0x72   :  { %5148 = vmatpush3.bf16.msra.mxu1 %v5748_v16  ;;  %v5800_v16 = vld [vmem:[%s7430_s1 + $0x500] sm:$0xff]  }
  0x73   :  { %5149 = vmatprep.subr.bf16.mxu1 %v5750_v18  ;;  %v948_v18 = vcombine.high %v926_v12, %v926_v12 }
  0x74   :  { %5128 = vmatpush3.bf16.msra.mxu0 %v5751_v19  ;;  %v5802_v19 = vld [vmem:[%s7430_s1 + $0x548] sm:$0xff]  }
  0x75   :  { %5129 = vmatprep.subr.bf16.mxu0 %v5753_v21  ;;  %v951_v21 = vcombine.high %v947_v15, %v947_v15 }
  0x76   :  { %5150 = vmatpush3.bf16.msra.mxu1 %v5752_v20  ;;  %v5803_v20 = vld [vmem:[%s7430_s1 + $0x5c8] sm:$0xff]  }
  0x77   :  { %5151 = vmatprep.subr.bf16.mxu1 %v5754_v22  ;;  %v5804_v22 = vld [vmem:[%s7430_s1 + $0x508] sm:$0xff]  }
  0x78   :  { %5130 = vmatpush3.bf16.msra.mxu0 %v5755_v23  ;;  %v5805_v23 = vld [vmem:[%s7430_s1 + $0x588] sm:$0xff]  }
  0x79   :  { %5131 = vmatprep.subr.bf16.mxu0 %v5757_v25  ;;  %v5807_v25 = vld [vmem:[%s7430_s1 + $0x5d0] sm:$0xff]  }
  0x7a   :  { %5152 = vmatpush3.bf16.msra.mxu1 %v5756_v24  ;;  %v5806_v24 = vld [vmem:[%s7430_s1 + $0x550] sm:$0xff]  }
  0x7b   :  { %5153 = vmatprep.subr.bf16.mxu1 %v5758_v26  ;;  %v5808_v26 = vld [vmem:[%s7430_s1 + $0x510] sm:$0xff]  }
  0x7c   :  { %5132 = vmatpush3.bf16.msra.mxu0 %v5759_v27  ;;  %v5809_v27 = vld [vmem:[%s7430_s1 + $0x590] sm:$0xff]  }
  0x7d   :  { %5133 = vmatprep.subr.bf16.mxu0 %v5761_v29  ;;  %v5811_v29 = vld [vmem:[%s7430_s1 + $0x5d8] sm:$0xff]  }
  0x7e   :  { %5154 = vmatpush3.bf16.msra.mxu1 %v5760_v28  ;;  %v5810_v28 = vld [vmem:[%s7430_s1 + $0x558] sm:$0xff]  }
  0x7f   :  { %5155 = vmatprep.subr.bf16.mxu1 %v5762_v30  ;;  %v5812_v30 = vld [vmem:[%s7430_s1 + $0x518] sm:$0xff]  }
  0x80   :  { %5134 = vmatpush3.bf16.msra.mxu0 %v5763_v31  ;;  %v5813_v31 = vld [vmem:[%s7430_s1 + $0x598] sm:$0xff]  }
  0x81   :  { %5163 = vmatprep.subr.bf16.mxu0 %v5766_v34  ;;  %v5816_v34 = vld [vmem:[%s7430_s1 + $0x520] sm:$0xff]  }
  0x82   :  { %5156 = vmatpush3.bf16.msra.mxu1 %v5764_v32  ;;  %v5814_v32 = vld [vmem:[%s7430_s1 + $0x560] sm:$0xff]  }
  0x83   :  { %3724 = vmatmul.mubr.bf16.vlgmr.msra.gmra.mrb[12].mxu0 %v884_v33  ;;  %5185 = vmatprep.subr.bf16.mxu1 %v5767_v35  ;;  %v5815_v33 = vld [vmem:[%s7430_s1 + $0x5e0] sm:$0xff]  }
  0x84   :  { %5164 = vmatpush3.bf16.msra.mxu0 %v5768_v36  ;;  %3803 = vmatprep.mubr.bf16.mxu0 %v940_v7  ;;  %v5817_v35 = vld [vmem:[%s7430_s1 + $0x5a0] sm:$0xff]   ;;  %v5818_v36 = vld [vmem:[%s7430_s1 + $0x568] sm:$0xff]  }
  0x85   :  { %3764 = vmatmul.mubr.bf16.vlgmr.msra.gmra.mrb[12].mxu1 %v900_v38  ;;  %5165 = vmatprep.subr.bf16.mxu0 %v5770_v39  ;;  %v5820_v38 = vld [vmem:[%s7430_s1 + $0x528] sm:$0xff]  }
  0x86   :  { %5186 = vmatpush3.bf16.msra.mxu1 %v5769_v37  ;;  %3843 = vmatprep.mubr.bf16.mxu1 %v950_v11  ;;  %v5819_v37 = vld [vmem:[%s7430_s1 + $0x5e8] sm:$0xff]   ;;  %v5855_v11 = vld [vmem:[%s7430_s1 + $0x670] sm:$0xff]  }
  0x87   :  { %5187 = vmatprep.subr.bf16.mxu1 %v5771_v40  ;;  %v5821_v39 = vld [vmem:[%s7430_s1 + $0x5a8] sm:$0xff]   ;;  %v5822_v40 = vld [vmem:[%s7430_s1 + $0x570] sm:$0xff]  }
  0x88   :  { %5166 = vmatpush3.bf16.msra.mxu0 %v5772_v42  ;;  %v5823_v42 = vld [vmem:[%s7430_s1 + $0x5f0] sm:$0xff]   ;;  %v5851_v7 = vld [vmem:[%s7430_s1 + $0x668] sm:$0xff]  }
  0x89   :  { %5167 = vmatprep.subr.bf16.mxu0 %v5774_v44  ;;  %v5825_v44 = vld [vmem:[%s7430_s1 + $0x5b0] sm:$0xff]  }
  0x8a   :  { %5188 = vmatpush3.bf16.msra.mxu1 %v5773_v43  ;;  %v5824_v43 = vld [vmem:[%s7430_s1 + $0x530] sm:$0xff]  }
  0x8b   :  { %5189 = vmatprep.subr.bf16.mxu1 %v5775_v45  ;;  %v5826_v45 = vld [vmem:[%s7430_s1 + $0x578] sm:$0xff]  }
  0x8c   :  { %5168 = vmatpush3.bf16.msra.mxu0 %v5776_v46  ;;  %v5827_v46 = vld [vmem:[%s7430_s1 + $0x5f8] sm:$0xff]  }
  0x8d   :  { %5169 = vmatprep.subr.bf16.mxu0 %v5778_v48  ;;  %v5829_v48 = vld [vmem:[%s7430_s1 + $0x5b8] sm:$0xff]  }
  0x8e   :  { %5190 = vmatpush3.bf16.msra.mxu1 %v5777_v47  ;;  %v5828_v47 = vld [vmem:[%s7430_s1 + $0x538] sm:$0xff]  }
  0x8f   :  { %5191 = vmatprep.subr.bf16.mxu1 %v5779_v49  ;;  %v933_v49 = vrot.slane %v6592_v4, %v6194_v41  ;;  %v5848_v4 = vld [vmem:[%s7430_s1 + $0x6e0] sm:$0xff]  }
  0x90   :  { %5170 = vmatpush3.bf16.msra.mxu0 %v5780_v50  ;;  %v5831_v50 = vld [vmem:[%s7430_s1 + $0x640] sm:$0xff]  }
  0x91   :  { %5171 = vmatprep.subr.bf16.mxu0 %v5782_v52  ;;  %v5833_v52 = vld [vmem:[%s7430_s1 + $0x600] sm:$0xff]  }
  0x92   :  { %5192 = vmatpush3.bf16.msra.mxu1 %v5781_v51  ;;  %v5832_v51 = vld [vmem:[%s7430_s1 + $0x6c0] sm:$0xff]  }
  0x93   :  { %5193 = vmatprep.subr.bf16.mxu1 %v5783_v53  ;;  %v5834_v53 = vld [vmem:[%s7430_s1 + $0x680] sm:$0xff]  }
  0x94   :  { %5172 = vmatpush3.bf16.msra.mxu0 %v5784_v54  ;;  %v949_v54 = vcombine.high %v933_v49, %v933_v49 }
  0x95   :  { %5173 = vmatprep.subr.bf16.mxu0 %v5786_v56  ;;  %v5836_v56 = vld [vmem:[%s7430_s1 + $0x6c8] sm:$0xff]  }
  0x96   :  { %5194 = vmatpush3.bf16.msra.mxu1 %v5785_v55  ;;  %v5835_v55 = vld [vmem:[%s7430_s1 + $0x648] sm:$0xff]  }
  0x97   :  { %5195 = vmatprep.subr.bf16.mxu1 %v5787_v57  ;;  %v5837_v57 = vld [vmem:[%s7430_s1 + $0x608] sm:$0xff]  }
  0x98   :  { %5174 = vmatpush3.bf16.msra.mxu0 %v5788_v58  ;;  %v5838_v58 = vld [vmem:[%s7430_s1 + $0x688] sm:$0xff]  }
  0x99   :  { %5175 = vmatprep.subr.bf16.mxu0 %v5790_v60  ;;  %v5840_v60 = vld [vmem:[%s7430_s1 + $0x6d0] sm:$0xff]  }
  0x9a   :  { %5196 = vmatpush3.bf16.msra.mxu1 %v5789_v59  ;;  %v5839_v59 = vld [vmem:[%s7430_s1 + $0x650] sm:$0xff]  }
  0x9b   :  { %5197 = vmatprep.subr.bf16.mxu1 %v5791_v62  ;;  %v5842_v62 = vld [vmem:[%s7430_s1 + $0x690] sm:$0xff]  }
  0x9c   :  { %5176 = vmatpush3.bf16.msra.mxu0 %v5792_v1  ;;  %v5845_v1 = vld [vmem:[%s7430_s1 + $0x618] sm:$0xff]  }
  0x9d   :  { %5177 = vmatprep.subr.bf16.mxu0 %v5794_v5  ;;  %v5849_v5 = vld [vmem:[%s7430_s1 + $0x620] sm:$0xff]  }
  0x9e   :  { %5198 = vmatpush3.bf16.msra.mxu1 %v5793_v2  ;;  %v5846_v2 = vld [vmem:[%s7430_s1 + $0x698] sm:$0xff]  }
  0x9f   :  { %5199 = vmatprep.subr.bf16.mxu1 %v5795_v6  ;;  %v5850_v6 = vld [vmem:[%s7430_s1 + $0x6a0] sm:$0xff]  }
  0xa0   :  { %5178 = vmatpush3.bf16.msra.mxu0 %v5796_v9  ;;  %v5853_v9 = vld [vmem:[%s7430_s1 + $0x628] sm:$0xff]  }
  0xa1   :  { %5207 = vmatprep.subr.bf16.mxu0 %v5798_v13  ;;  %v27_v13 = vld [vmem:[%s7429_s0 + $0x18] sm:$0xff] }
  0xa2   :  { %5200 = vmatpush3.bf16.msra.mxu1 %v5797_v10  ;;  %v5854_v10 = vld [vmem:[%s7430_s1 + $0x6a8] sm:$0xff]  }
  0xa3   :  { %3804 = vmatmul.mubr.bf16.vlgmr.msra.gmra.mrb[16].mxu0 %v926_v12  ;;  %5229 = vmatprep.subr.bf16.mxu1 %v5799_v14  ;;  %v5856_v12 = vld [vmem:[%s7430_s1 + $0x6f0] sm:$0xff]  }
  0xa4   :  { %5208 = vmatpush3.bf16.msra.mxu0 %v5800_v16  ;;  %3883 = vmatprep.mubr.bf16.mxu0 %v947_v15  ;;  %v5857_v14 = vld [vmem:[%s7430_s1 + $0x630] sm:$0xff]   ;;  %v959_v15 = vrot.slane %v27_v13, %v6194_v41  ;;  %v952_v16 = vcombine.high %v27_v13, %v27_v13 }
  0xa5   :  { %3844 = vmatmul.mubr.bf16.vlgmr.msra.gmra.mrb[16].mxu1 %v948_v18  ;;  %5209 = vmatprep.subr.bf16.mxu0 %v5802_v19  ;;  %v5859_v18 = vld [vmem:[%s7430_s1 + $0x678] sm:$0xff]  }
  0xa6   :  { %5230 = vmatpush3.bf16.msra.mxu1 %v5801_v17  ;;  %3923 = vmatprep.mubr.bf16.mxu1 %v951_v21  ;;  %v5858_v17 = vld [vmem:[%s7430_s1 + $0x6b0] sm:$0xff]   ;;  %v967_v19 = vcombine.high %v959_v15, %v959_v15  ;;  %v5860_v21 = vld [vmem:[%s7430_s1 + $0x6f8] sm:$0xff]  }
  0xa7   :  { %5231 = vmatprep.subr.bf16.mxu1 %v5803_v20  ;;  %v6801_v20 = vrot.slane %v952_v16, %v6194_v41  ;;  %v5898_v16 = vld [vmem:[%s7430_s1 + $0x800] sm:$0xff]  }
  0xa8   :  { %5210 = vmatpush3.bf16.msra.mxu0 %v5804_v22  ;;  %v5861_v22 = vld [vmem:[%s7430_s1 + $0x638] sm:$0xff]  }
  0xa9   :  { %5211 = vmatprep.subr.bf16.mxu0 %v5806_v24  ;;  %v968_v24 = vcombine.high %v6801_v20, %v6801_v20  ;;  %v982_v13 = vrot.slane %v6801_v20, %v6194_v41  ;;  %v5901_v20 = vld [vmem:[%s7430_s1 + $0x8c8] sm:$0xff]  }
  0xaa   :  { %5232 = vmatpush3.bf16.msra.mxu1 %v5805_v23  ;;  %v989_v23 = vrot.slane %v967_v19, %v6194_v41  ;;  %v5900_v19 = vld [vmem:[%s7430_s1 + $0x848] sm:$0xff]  }
  0xab   :  { %5233 = vmatprep.subr.bf16.mxu1 %v5807_v25  ;;  %v5862_v25 = vld [vmem:[%s7430_s1 + $0x6b8] sm:$0xff]  }
  0xac   :  { %5212 = vmatpush3.bf16.msra.mxu0 %v5808_v26  ;;  %v999_v26 = vcombine.high %v989_v23, %v989_v23 }
  0xad   :  { %5213 = vmatprep.subr.bf16.mxu0 %v5810_v28  ;;  %v5863_v28 = vld [vmem:[%s7430_s1 + $0x740] sm:$0xff]  }
  0xae   :  { %5234 = vmatpush3.bf16.msra.mxu1 %v5809_v27  ;;  %v975_v27 = vrot.slane %v959_v15, %v6194_v41  ;;  %v5897_v15 = vld [vmem:[%s7430_s1 + $0x8c0] sm:$0xff]  }
  0xaf   :  { %5235 = vmatprep.subr.bf16.mxu1 %v5811_v29  ;;  %v5864_v29 = vld [vmem:[%s7430_s1 + $0x7c0] sm:$0xff]  }
  0xb0   :  { %5214 = vmatpush3.bf16.msra.mxu0 %v5812_v30  ;;  %v996_v30 = vrot.slane %v968_v24, %v6194_v41  ;;  %v5905_v24 = vld [vmem:[%s7430_s1 + $0x8d0] sm:$0xff]  }
  0xb1   :  { %5215 = vmatprep.subr.bf16.mxu0 %v5814_v32  ;;  %v5866_v32 = vld [vmem:[%s7430_s1 + $0x780] sm:$0xff]  }
  0xb2   :  { %5236 = vmatpush3.bf16.msra.mxu1 %v5813_v31  ;;  %v5865_v31 = vld [vmem:[%s7430_s1 + $0x700] sm:$0xff]  }
  0xb3   :  { %5237 = vmatprep.subr.bf16.mxu1 %v5815_v33  ;;  %v997_v33 = vcombine.high %v975_v27, %v975_v27 }
  0xb4   :  { %5216 = vmatpush3.bf16.msra.mxu0 %v5816_v34  ;;  %v5867_v34 = vld [vmem:[%s7430_s1 + $0x748] sm:$0xff]  }
  0xb5   :  { %5217 = vmatprep.subr.bf16.mxu0 %v5818_v36  ;;  %v1000_v36 = vcombine.high %v996_v30, %v996_v30 }
  0xb6   :  { %5238 = vmatpush3.bf16.msra.mxu1 %v5817_v35  ;;  %v5868_v35 = vld [vmem:[%s7430_s1 + $0x7c8] sm:$0xff]  }
  0xb7   :  { %5239 = vmatprep.subr.bf16.mxu1 %v5819_v37  ;;  %v5869_v37 = vld [vmem:[%s7430_s1 + $0x708] sm:$0xff]  }
  0xb8   :  { %5218 = vmatpush3.bf16.msra.mxu0 %v5820_v38  ;;  %v5870_v38 = vld [vmem:[%s7430_s1 + $0x788] sm:$0xff]  }
  0xb9   :  { %5219 = vmatprep.subr.bf16.mxu0 %v5822_v40  ;;  %v5872_v40 = vld [vmem:[%s7430_s1 + $0x7d0] sm:$0xff]  }
  0xba   :  { %5240 = vmatpush3.bf16.msra.mxu1 %v5821_v39  ;;  %v5871_v39 = vld [vmem:[%s7430_s1 + $0x750] sm:$0xff]  }
  0xbb   :  { %5241 = vmatprep.subr.bf16.mxu1 %v5823_v42  ;;  %v5873_v42 = vld [vmem:[%s7430_s1 + $0x710] sm:$0xff]  }
  0xbc   :  { %5220 = vmatpush3.bf16.msra.mxu0 %v5824_v43  ;;  %v5874_v43 = vld [vmem:[%s7430_s1 + $0x790] sm:$0xff]  }
  0xbd   :  { %5221 = vmatprep.subr.bf16.mxu0 %v5826_v45  ;;  %v5876_v45 = vld [vmem:[%s7430_s1 + $0x7d8] sm:$0xff]  }
  0xbe   :  { %5242 = vmatpush3.bf16.msra.mxu1 %v5825_v44  ;;  %v5875_v44 = vld [vmem:[%s7430_s1 + $0x758] sm:$0xff]  }
  0xbf   :  { %5243 = vmatprep.subr.bf16.mxu1 %v5827_v46  ;;  %v5877_v46 = vld [vmem:[%s7430_s1 + $0x718] sm:$0xff]  }
  0xc0   :  { %5222 = vmatpush3.bf16.msra.mxu0 %v5828_v47  ;;  %v5878_v47 = vld [vmem:[%s7430_s1 + $0x798] sm:$0xff]  }
  0xc1   :  { %5251 = vmatprep.subr.bf16.mxu0 %v5831_v50  ;;  %v5881_v50 = vld [vmem:[%s7430_s1 + $0x720] sm:$0xff]  }
  0xc2   :  { %5244 = vmatpush3.bf16.msra.mxu1 %v5829_v48  ;;  %v5879_v48 = vld [vmem:[%s7430_s1 + $0x760] sm:$0xff]  }
  0xc3   :  { %3884 = vmatmul.mubr.bf16.vlgmr.msra.gmra.mrb[20].mxu0 %v933_v49  ;;  %5273 = vmatprep.subr.bf16.mxu1 %v5832_v51  ;;  %v5880_v49 = vld [vmem:[%s7430_s1 + $0x7e0] sm:$0xff]  }
  0xc4   :  { %5252 = vmatpush3.bf16.msra.mxu0 %v5833_v52  ;;  %3963 = vmatprep.mubr.bf16.mxu0 %v989_v23  ;;  %v5882_v51 = vld [vmem:[%s7430_s1 + $0x7a0] sm:$0xff]   ;;  %v5883_v52 = vld [vmem:[%s7430_s1 + $0x768] sm:$0xff]   ;;  %v5904_v23 = vld [vmem:[%s7430_s1 + $0x850] sm:$0xff]  }
  0xc5   :  { %3924 = vmatmul.mubr.bf16.vlgmr.msra.gmra.mrb[20].mxu1 %v949_v54  ;;  %5253 = vmatprep.subr.bf16.mxu0 %v5835_v55  ;;  %v5885_v54 = vld [vmem:[%s7430_s1 + $0x728] sm:$0xff]  }
  0xc6   :  { %5274 = vmatpush3.bf16.msra.mxu1 %v5834_v53  ;;  %4003 = vmatprep.mubr.bf16.mxu1 %v999_v26  ;;  %v5884_v53 = vld [vmem:[%s7430_s1 + $0x7e8] sm:$0xff]   ;;  %v5907_v26 = vld [vmem:[%s7430_s1 + $0x890] sm:$0xff]  }
  0xc7   :  { %5275 = vmatprep.subr.bf16.mxu1 %v5836_v56  ;;  %v5886_v55 = vld [vmem:[%s7430_s1 + $0x7a8] sm:$0xff]   ;;  %v5887_v56 = vld [vmem:[%s7430_s1 + $0x770] sm:$0xff]  }
  0xc8   :  { %5254 = vmatpush3.bf16.msra.mxu0 %v5837_v57 }
  0xc9   :  { %5255 = vmatprep.subr.bf16.mxu0 %v5839_v59  ;;  %v798_v59 = vstv %s7433_s4 }
  0xca   :  { %5276 = vmatpush3.bf16.msra.mxu1 %v5838_v58  ;;  %v5888_v58 = vld [vmem:[%s7430_s1 + $0x7f0] sm:$0xff]  }
  0xcb   :  { %5277 = vmatprep.subr.bf16.mxu1 %v5840_v60 }
  0xcc   :  { %5256 = vmatpush3.bf16.msra.mxu0 %v5841_v61  ;;  %v5889_v61 = vld [vmem:[%s7430_s1 + $0x730] sm:$0xff]  }
  0xcd   :  { %5257 = vmatprep.subr.bf16.mxu0 %v5843_v63 }
  0xce   :  { %5278 = vmatpush3.bf16.msra.mxu1 %v5842_v62 }
  0xcf   :  { %5279 = vmatprep.subr.bf16.mxu1 %v5844_v0 }
  0xd0   :  { %5258 = vmatpush3.bf16.msra.mxu0 %v5845_v1  ;;  %v5890_v1 = vld [vmem:[%s7430_s1 + $0x7b0] sm:$0xff]  }
  0xd1   :  { %5259 = vmatprep.subr.bf16.mxu0 %v5847_v3 }
  0xd2   :  { %5280 = vmatpush3.bf16.msra.mxu1 %v5846_v2  ;;  %v5891_v2 = vld [vmem:[%s7430_s1 + $0x778] sm:$0xff]  }
  0xd3   :  { %5281 = vmatprep.subr.bf16.mxu1 %v5848_v4 }
  0xd4   :  { %5260 = vmatpush3.bf16.msra.mxu0 %v5849_v5 }
  0xd5   :  { %5261 = vmatprep.subr.bf16.mxu0 %v5851_v7 }
  0xd6   :  { %5282 = vmatpush3.bf16.msra.mxu1 %v5850_v6 }
  0xd7   :  { %5283 = vmatprep.subr.bf16.mxu1 %v5852_v8  ;;  %v5892_v8 = vld [vmem:[%s7430_s1 + $0x7f8] sm:$0xff]  }
  0xd8   :  { %5262 = vmatpush3.bf16.msra.mxu0 %v5853_v9 }
  0xd9   :  { %5263 = vmatprep.subr.bf16.mxu0 %v5855_v11 }
  0xda   :  { %5284 = vmatpush3.bf16.msra.mxu1 %v5854_v10  ;;  %v5893_v10 = vld [vmem:[%s7430_s1 + $0x738] sm:$0xff]  }
  0xdb   :  { %5285 = vmatprep.subr.bf16.mxu1 %v5856_v12  ;;  %v5894_v12 = vld [vmem:[%s7430_s1 + $0x7b8] sm:$0xff]  }
  0xdc   :  { %5264 = vmatpush3.bf16.msra.mxu0 %v5857_v14  ;;  %v5896_v14 = vld [vmem:[%s7430_s1 + $0x840] sm:$0xff]  }
  0xdd   :  { %5265 = vmatprep.subr.bf16.mxu0 %v5859_v18  ;;  %v998_v18 = vcombine.high %v982_v13, %v982_v13 }
  0xde   :  { %5286 = vmatpush3.bf16.msra.mxu1 %v5858_v17  ;;  %v5899_v17 = vld [vmem:[%s7430_s1 + $0x880] sm:$0xff]  }
  0xdf   :  { %5287 = vmatprep.subr.bf16.mxu1 %v5860_v21  ;;  %v5902_v21 = vld [vmem:[%s7430_s1 + $0x808] sm:$0xff]  }
  0xe0   :  { %5266 = vmatpush3.bf16.msra.mxu0 %v5861_v22  ;;  %v5903_v22 = vld [vmem:[%s7430_s1 + $0x888] sm:$0xff]  }
  0xe1   :  { %5295 = vmatprep.subr.bf16.mxu0 %v5863_v28  ;;  %v5909_v28 = vld [vmem:[%s7430_s1 + $0x8d8] sm:$0xff]  }
  0xe2   :  { %5288 = vmatpush3.bf16.msra.mxu1 %v5862_v25  ;;  %v5906_v25 = vld [vmem:[%s7430_s1 + $0x810] sm:$0xff]  }
  0xe3   :  { %3964 = vmatmul.mubr.bf16.vlgmr.msra.gmra.mrb[24].mxu0 %v975_v27  ;;  %5317 = vmatprep.subr.bf16.mxu1 %v5864_v29  ;;  %v5908_v27 = vld [vmem:[%s7430_s1 + $0x858] sm:$0xff]  }
  0xe4   :  { %5296 = vmatpush3.bf16.msra.mxu0 %v5865_v31  ;;  %4043 = vmatprep.mubr.bf16.mxu0 %v996_v30  ;;  %v5910_v29 = vld [vmem:[%s7430_s1 + $0x818] sm:$0xff]   ;;  %v5912_v31 = vld [vmem:[%s7430_s1 + $0x860] sm:$0xff]  }
  0xe5   :  { %4004 = vmatmul.mubr.bf16.vlgmr.msra.gmra.mrb[24].mxu1 %v997_v33  ;;  %5297 = vmatprep.subr.bf16.mxu0 %v5867_v34  ;;  %v5911_v30 = vld [vmem:[%s7430_s1 + $0x898] sm:$0xff]   ;;  %v5914_v33 = vld [vmem:[%s7430_s1 + $0x820] sm:$0xff]  }
  0xe6   :  { %5318 = vmatpush3.bf16.msra.mxu1 %v5866_v32  ;;  %4083 = vmatprep.mubr.bf16.mxu1 %v1000_v36  ;;  %v5913_v32 = vld [vmem:[%s7430_s1 + $0x8e0] sm:$0xff]   ;;  %v5917_v36 = vld [vmem:[%s7430_s1 + $0x8e8] sm:$0xff]  }
  0xe7   :  { %5319 = vmatprep.subr.bf16.mxu1 %v5868_v35  ;;  %v5915_v34 = vld [vmem:[%s7430_s1 + $0x8a0] sm:$0xff]   ;;  %v5916_v35 = vld [vmem:[%s7430_s1 + $0x868] sm:$0xff]  }
  0xe8   :  { %5298 = vmatpush3.bf16.msra.mxu0 %v5869_v37  ;;  %v5918_v37 = vld [vmem:[%s7430_s1 + $0x828] sm:$0xff]  }
  0xe9   :  { %5299 = vmatprep.subr.bf16.mxu0 %v5871_v39  ;;  %v5920_v39 = vld [vmem:[%s7430_s1 + $0x870] sm:$0xff]  }
  0xea   :  { %5320 = vmatpush3.bf16.msra.mxu1 %v5870_v38  ;;  %v5919_v38 = vld [vmem:[%s7430_s1 + $0x8a8] sm:$0xff]  }
  0xeb   :  { %5321 = vmatprep.subr.bf16.mxu1 %v5872_v40 }
  0xec   :  { %5300 = vmatpush3.bf16.msra.mxu0 %v5873_v42  ;;  %v5921_v42 = vld [vmem:[%s7430_s1 + $0x8f0] sm:$0xff]  }
  0xed   :  { %5301 = vmatprep.subr.bf16.mxu0 %v5875_v44 }
  0xee   :  { %5322 = vmatpush3.bf16.msra.mxu1 %v5874_v43  ;;  %v28_v43 = vld [vmem:[%s7429_s0 + $0x20] sm:$0xff] }
  0xef   :  { %5323 = vmatprep.subr.bf16.mxu1 %v5876_v45  ;;  %v5922_v45 = vld [vmem:[%s7430_s1 + $0x830] sm:$0xff]  }
  0xf0   :  { %5302 = vmatpush3.bf16.msra.mxu0 %v5877_v46  ;;  %v1008_v46 = vrot.slane %v28_v43, %v6194_v41 }
  0xf1   :  { %5303 = vmatprep.subr.bf16.mxu0 %v5879_v48 }
  0xf2   :  { %5324 = vmatpush3.bf16.msra.mxu1 %v5878_v47  ;;  %v1001_v47 = vcombine.high %v28_v43, %v28_v43 }
  0xf3   :  { %5325 = vmatprep.subr.bf16.mxu1 %v5880_v49 }
  0xf4   :  { %5304 = vmatpush3.bf16.msra.mxu0 %v5881_v50 }
  0xf5   :  { %5305 = vmatprep.subr.bf16.mxu0 %v5883_v52 }
  0xf6   :  { %5326 = vmatpush3.bf16.msra.mxu1 %v5882_v51  ;;  %v5003_v57 = vpop.f32.mrb[0].mxu0 }
  0xf7   :  { %v5004_v60 = vpop.f32.mrb[1].mxu0  ;;  %5327 = vmatprep.subr.bf16.mxu1 %v5884_v53  ;;  %v5025_v62 = vpop.f32.mrb[0].mxu1  ;;  %v5923_v53 = vld [vmem:[%s7430_s1 + $0x8b0] sm:$0xff]  }
  0xf8   :  { %v5005_v63 = vadd.f32 %v5004_v60, %v5003_v57  ;;  %v5006_v0 = vpop.f32.mrb[2].mxu0  ;;  %5306 = vmatpush3.bf16.msra.mxu0 %v5885_v54  ;;  %v5026_v3 = vpop.f32.mrb[1].mxu1  ;;  %v5924_v54 = vld [vmem:[%s7430_s1 + $0x878] sm:$0xff]  }
  0xf9   :  { %v5007_v4 = vpop.f32.mrb[3].mxu0  ;;  %5307 = vmatprep.subr.bf16.mxu0 %v5887_v56  ;;  %v5027_v6 = vadd.f32 %v5026_v3, %v5025_v62  ;;  %v5028_v7 = vpop.f32.mrb[2].mxu1  ;;  %v7012_v56 = vrot.slane %v1001_v47, %v6194_v41  ;;  %v5925_v60 = vld [vmem:[%s7430_s1 + $0x8f8] sm:$0xff]  }
  0xfa   :  { %v3486_v5 = vadd.f32 %v5005_v63, %v798_v59  ;;  %5328 = vmatpush3.bf16.msra.mxu1 %v5886_v55  ;;  %v5029_v9 = vpop.f32.mrb[3].mxu1  ;;  %v1016_v55 = vcombine.high %v1008_v46, %v1008_v46  ;;  %v5926_v62 = vld [vmem:[%s7430_s1 + $0x838] sm:$0xff]   ;;  %v1024_v4 = vrot.slane %v1008_v46, %v6194_v41 }
  0xfb   :  { %5329 = vmatprep.subr.bf16.mxu1 %v5888_v58  ;;  %v1017_v0 = vcombine.high %v7012_v56, %v7012_v56  ;;  %v5931_v9 = vld [vmem:[%s7430_s1 + $0x980] sm:$0xff]  }
  0xfc   :  { %v6913_v11 = vadd.f32 %v5027_v6, %v3486_v5  ;;  %5308 = vmatpush3.bf16.msra.mxu0 %v5889_v61  ;;  %v1038_v63 = vrot.slane %v1016_v55, %v6194_v41  ;;  %v5928_v5 = vld [vmem:[%s7430_s1 + $0x940] sm:$0xff]  }
  0xfd   :  { %5309 = vmatprep.subr.bf16.mxu0 %v5891_v2  ;;  %v5927_v2 = vld [vmem:[%s7430_s1 + $0x8b8] sm:$0xff]   ;;  %v5929_v6 = vld [vmem:[%s7430_s1 + $0x9c0] sm:$0xff]   ;;  %v1045_v7 = vrot.slane %v1017_v0, %v6194_v41  ;;  %v5970_v0 = vld [vmem:[%s7430_s1 + $0xad0] sm:$0xff]  }
  0xfe   :  { %5330 = vmatpush3.bf16.msra.mxu1 %v5890_v1  ;;  %v1048_v3 = vcombine.high %v1038_v63, %v1038_v63  ;;  %v5962_v55 = vld [vmem:[%s7430_s1 + $0xac0] sm:$0xff]  }
  0xff   :  { %5331 = vmatprep.subr.bf16.mxu1 %v5892_v8  ;;  %v5930_v8 = vld [vmem:[%s7430_s1 + $0x900] sm:$0xff]  }
 0x100   :  { %5310 = vmatpush3.bf16.msra.mxu0 %v5893_v10  ;;  %v1046_v10 = vcombine.high %v1024_v4, %v1024_v4 }
 0x101   :  { %5339 = vmatprep.subr.bf16.mxu0 %v5896_v14  ;;  %v5934_v14 = vld [vmem:[%s7430_s1 + $0x908] sm:$0xff]  }
 0x102   :  { %5332 = vmatpush3.bf16.msra.mxu1 %v5894_v12  ;;  %v5933_v12 = vld [vmem:[%s7430_s1 + $0x9c8] sm:$0xff]  }
 0x103   :  { %4044 = vmatmul.mubr.bf16.vlgmr.msra.gmra.mrb[28].mxu0 %v982_v13  ;;  %5361 = vmatprep.subr.bf16.mxu1 %v5897_v15  ;;  %v1049_v13 = vcombine.high %v1045_v7, %v1045_v7  ;;  %v5935_v15 = vld [vmem:[%s7430_s1 + $0x988] sm:$0xff]  }
 0x104   :  { %5340 = vmatpush3.bf16.msra.mxu0 %v5898_v16  ;;  %4123 = vmatprep.mubr.bf16.mxu0 %v1038_v63  ;;  %v5936_v16 = vld [vmem:[%s7430_s1 + $0x950] sm:$0xff]  }
 0x105   :  { %4084 = vmatmul.mubr.bf16.vlgmr.msra.gmra.mrb[28].mxu1 %v998_v18  ;;  %5341 = vmatprep.subr.bf16.mxu0 %v5900_v19  ;;  %v5938_v18 = vld [vmem:[%s7430_s1 + $0x910] sm:$0xff]  }
 0x106   :  { %5362 = vmatpush3.bf16.msra.mxu1 %v5899_v17  ;;  %4163 = vmatprep.mubr.bf16.mxu1 %v1048_v3  ;;  %v5937_v17 = vld [vmem:[%s7430_s1 + $0x9d0] sm:$0xff]   ;;  %v5973_v3 = vld [vmem:[%s7430_s1 + $0xa58] sm:$0xff]  }
 0x107   :  { %5363 = vmatprep.subr.bf16.mxu1 %v5901_v20  ;;  %v5939_v19 = vld [vmem:[%s7430_s1 + $0x990] sm:$0xff]   ;;  %v5940_v20 = vld [vmem:[%s7430_s1 + $0x958] sm:$0xff]  }
 0x108   :  { %5342 = vmatpush3.bf16.msra.mxu0 %v5902_v21  ;;  %v5941_v21 = vld [vmem:[%s7430_s1 + $0x9d8] sm:$0xff]   ;;  %v5969_v63 = vld [vmem:[%s7430_s1 + $0xa50] sm:$0xff]  }
 0x109   :  { %5343 = vmatprep.subr.bf16.mxu0 %v5904_v23  ;;  %v5943_v23 = vld [vmem:[%s7430_s1 + $0x998] sm:$0xff]  }
 0x10a   :  { %5364 = vmatpush3.bf16.msra.mxu1 %v5903_v22  ;;  %v5942_v22 = vld [vmem:[%s7430_s1 + $0x918] sm:$0xff]  }
 0x10b   :  { %5365 = vmatprep.subr.bf16.mxu1 %v5905_v24  ;;  %v5944_v24 = vld [vmem:[%s7430_s1 + $0x960] sm:$0xff]  }
 0x10c   :  { %5344 = vmatpush3.bf16.msra.mxu0 %v5906_v25  ;;  %v5945_v25 = vld [vmem:[%s7430_s1 + $0x9e0] sm:$0xff]  }
 0x10d   :  { %5345 = vmatprep.subr.bf16.mxu0 %v5908_v27  ;;  %v5947_v27 = vld [vmem:[%s7430_s1 + $0x9a0] sm:$0xff]  }
 0x10e   :  { %5366 = vmatpush3.bf16.msra.mxu1 %v5907_v26  ;;  %v5946_v26 = vld [vmem:[%s7430_s1 + $0x920] sm:$0xff]  }
 0x10f   :  { %5367 = vmatprep.subr.bf16.mxu1 %v5909_v28  ;;  %v5948_v28 = vld [vmem:[%s7430_s1 + $0x968] sm:$0xff]  }
 0x110   :  { %5346 = vmatpush3.bf16.msra.mxu0 %v5910_v29  ;;  %v5949_v29 = vld [vmem:[%s7430_s1 + $0x9e8] sm:$0xff]  }
 0x111   :  { %5347 = vmatprep.subr.bf16.mxu0 %v5912_v31  ;;  %v5951_v31 = vld [vmem:[%s7430_s1 + $0x9a8] sm:$0xff]  }
 0x112   :  { %5368 = vmatpush3.bf16.msra.mxu1 %v5911_v30  ;;  %v5950_v30 = vld [vmem:[%s7430_s1 + $0x928] sm:$0xff]  }
 0x113   :  { %5369 = vmatprep.subr.bf16.mxu1 %v5913_v32  ;;  %v5952_v32 = vld [vmem:[%s7430_s1 + $0x970] sm:$0xff]  }
 0x114   :  { %5348 = vmatpush3.bf16.msra.mxu0 %v5914_v33 }
 0x115   :  { %5349 = vmatprep.subr.bf16.mxu0 %v5916_v35 }
 0x116   :  { %5370 = vmatpush3.bf16.msra.mxu1 %v5915_v34  ;;  %v5047_v40 = vpop.f32.mrb[4].mxu0  ;;  %v5953_v34 = vld [vmem:[%s7430_s1 + $0x9f0] sm:$0xff]  }
 0x117   :  { %v5048_v44 = vpop.f32.mrb[5].mxu0  ;;  %5371 = vmatprep.subr.bf16.mxu1 %v5917_v36  ;;  %v5069_v48 = vpop.f32.mrb[4].mxu1  ;;  %v5954_v36 = vld [vmem:[%s7430_s1 + $0x930] sm:$0xff]  }
 0x118   :  { %v5049_v49 = vadd.f32 %v5048_v44, %v5047_v40  ;;  %v5050_v50 = vpop.f32.mrb[6].mxu0  ;;  %5350 = vmatpush3.bf16.msra.mxu0 %v5918_v37  ;;  %v5070_v51 = vpop.f32.mrb[5].mxu1  ;;  %v5955_v40 = vld [vmem:[%s7430_s1 + $0x9b0] sm:$0xff]  }
 0x119   :  { %v5051_v52 = vpop.f32.mrb[7].mxu0  ;;  %5351 = vmatprep.subr.bf16.mxu0 %v5920_v39  ;;  %v5071_v58 = vadd.f32 %v5070_v51, %v5069_v48  ;;  %v5072_v59 = vpop.f32.mrb[6].mxu1  ;;  %v5957_v48 = vld [vmem:[%s7430_s1 + $0x9f8] sm:$0xff]  }
 0x11a   :  { %v3566_v57 = vadd.f32 %v5049_v49, %v6913_v11  ;;  %5372 = vmatpush3.bf16.msra.mxu1 %v5919_v38  ;;  %v5073_v61 = vpop.f32.mrb[7].mxu1  ;;  %v5932_v11 = vld [vmem:[%s7430_s1 + $0x948] sm:$0xff]   ;;  %v5958_v50 = vld [vmem:[%s7430_s1 + $0x938] sm:$0xff]  }
 0x11b   :  { %5373 = vmatprep.subr.bf16.mxu1 %v5921_v42  ;;  %v5956_v42 = vld [vmem:[%s7430_s1 + $0x978] sm:$0xff]   ;;  %v5965_v59 = vld [vmem:[%s7430_s1 + $0xa48] sm:$0xff]  }
 0x11c   :  { %v7024_v1 = vadd.f32 %v5071_v58, %v3566_v57  ;;  %5352 = vmatpush3.bf16.msra.mxu0 %v5922_v45  ;;  %v5959_v52 = vld [vmem:[%s7430_s1 + $0x9b8] sm:$0xff]   ;;  %v5963_v57 = vld [vmem:[%s7430_s1 + $0xa00] sm:$0xff]   ;;  %v5967_v61 = vld [vmem:[%s7430_s1 + $0xa08] sm:$0xff]  }
 0x11d   :  { %5353 = vmatprep.subr.bf16.mxu0 %v5924_v54  ;;  %v5961_v54 = vld [vmem:[%s7430_s1 + $0xa40] sm:$0xff]  }
 0x11e   :  { %5374 = vmatpush3.bf16.msra.mxu1 %v5923_v53  ;;  %v1031_v53 = vrot.slane %v7012_v56, %v6194_v41  ;;  %v5964_v58 = vld [vmem:[%s7430_s1 + $0xa80] sm:$0xff]  }
 0x11f   :  { %5375 = vmatprep.subr.bf16.mxu1 %v5925_v60  ;;  %v5966_v60 = vld [vmem:[%s7430_s1 + $0xac8] sm:$0xff]  }
 0x120   :  { %5354 = vmatpush3.bf16.msra.mxu0 %v5926_v62  ;;  %v1047_v56 = vcombine.high %v1031_v53, %v1031_v53  ;;  %v5968_v62 = vld [vmem:[%s7430_s1 + $0xa88] sm:$0xff]  }
 0x121   :  { %5383 = vmatprep.subr.bf16.mxu0 %v5928_v5  ;;  %v5975_v5 = vld [vmem:[%s7430_s1 + $0xa18] sm:$0xff]  }
 0x122   :  { %5376 = vmatpush3.bf16.msra.mxu1 %v5927_v2  ;;  %v5972_v2 = vld [vmem:[%s7430_s1 + $0xa90] sm:$0xff]  }
 0x123   :  { %4124 = vmatmul.mubr.bf16.vlgmr.msra.gmra.mrb[32].mxu0 %v1024_v4  ;;  %5405 = vmatprep.subr.bf16.mxu1 %v5929_v6  ;;  %v5974_v4 = vld [vmem:[%s7430_s1 + $0xad8] sm:$0xff]  }
 0x124   :  { %5384 = vmatpush3.bf16.msra.mxu0 %v5930_v8  ;;  %4203 = vmatprep.mubr.bf16.mxu0 %v1045_v7  ;;  %v5976_v6 = vld [vmem:[%s7430_s1 + $0xa98] sm:$0xff]   ;;  %v5977_v7 = vld [vmem:[%s7430_s1 + $0xa60] sm:$0xff]  }
 0x125   :  { %4164 = vmatmul.mubr.bf16.vlgmr.msra.gmra.mrb[32].mxu1 %v1046_v10  ;;  %5385 = vmatprep.subr.bf16.mxu0 %v5932_v11  ;;  %v5978_v8 = vld [vmem:[%s7430_s1 + $0xae0] sm:$0xff]   ;;  %v5981_v11 = vld [vmem:[%s7430_s1 + $0xa68] sm:$0xff]  }
 0x126   :  { %5406 = vmatpush3.bf16.msra.mxu1 %v5931_v9  ;;  %4243 = vmatprep.mubr.bf16.mxu1 %v1049_v13  ;;  %v5979_v9 = vld [vmem:[%s7430_s1 + $0xa20] sm:$0xff]   ;;  %v5983_v13 = vld [vmem:[%s7430_s1 + $0xa28] sm:$0xff]  }
 0x127   :  { %5407 = vmatprep.subr.bf16.mxu1 %v5933_v12  ;;  %v5980_v10 = vld [vmem:[%s7430_s1 + $0xaa0] sm:$0xff]   ;;  %v5982_v12 = vld [vmem:[%s7430_s1 + $0xae8] sm:$0xff]  }
 0x128   :  { %5386 = vmatpush3.bf16.msra.mxu0 %v5934_v14  ;;  %v5984_v14 = vld [vmem:[%s7430_s1 + $0xaa8] sm:$0xff]  }
 0x129   :  { %5387 = vmatprep.subr.bf16.mxu0 %v5936_v16 }
 0x12a   :  { %5408 = vmatpush3.bf16.msra.mxu1 %v5935_v15  ;;  %v5985_v15 = vld [vmem:[%s7430_s1 + $0xa70] sm:$0xff]  }
 0x12b   :  { %5409 = vmatprep.subr.bf16.mxu1 %v5937_v17  ;;  %v5986_v17 = vld [vmem:[%s7430_s1 + $0xaf0] sm:$0xff]  }
 0x12c   :  { %5388 = vmatpush3.bf16.msra.mxu0 %v5938_v18 }
 0x12d   :  { %5389 = vmatprep.subr.bf16.mxu0 %v5940_v20  ;;  %v29_v20 = vld [vmem:[%s7429_s0 + $0x28] sm:$0xff] }
 0x12e   :  { %5410 = vmatpush3.bf16.msra.mxu1 %v5939_v19  ;;  %v5987_v19 = vld [vmem:[%s7430_s1 + $0xa30] sm:$0xff]  }
 0x12f   :  { %5411 = vmatprep.subr.bf16.mxu1 %v5941_v21 }
 0x130   :  { %5390 = vmatpush3.bf16.msra.mxu0 %v5942_v22 }
 0x131   :  { %5391 = vmatprep.subr.bf16.mxu0 %v5944_v24  ;;  %v1057_v24 = vrot.slane %v29_v20, %v6194_v41 }
 0x132   :  { %5412 = vmatpush3.bf16.msra.mxu1 %v5943_v23 }
 0x133   :  { %5413 = vmatprep.subr.bf16.mxu1 %v5945_v25  ;;  %v1050_v25 = vcombine.high %v29_v20, %v29_v20 }
 0x134   :  { %5392 = vmatpush3.bf16.msra.mxu0 %v5946_v26 }
 0x135   :  { %5393 = vmatprep.subr.bf16.mxu0 %v5948_v28  ;;  %v5988_v28 = vld [vmem:[%s7430_s1 + $0xab0] sm:$0xff]  }
 0x136   :  { %5414 = vmatpush3.bf16.msra.mxu1 %v5947_v27  ;;  %v5091_v33 = vpop.f32.mrb[8].mxu0 }
 0x137   :  { %v5092_v35 = vpop.f32.mrb[9].mxu0  ;;  %5415 = vmatprep.subr.bf16.mxu1 %v5949_v29  ;;  %v5989_v29 = vld [vmem:[%s7430_s1 + $0xa78] sm:$0xff]  }
 0x138   :  { %v5113_v37 = vpop.f32.mrb[8].mxu1  ;;  %v5093_v38 = vadd.f32 %v5092_v35, %v5091_v33  ;;  %v5094_v39 = vpop.f32.mrb[10].mxu0  ;;  %5394 = vmatpush3.bf16.msra.mxu0 %v5950_v30  ;;  %v5990_v33 = vld [vmem:[%s7430_s1 + $0xaf8] sm:$0xff]  }
 0x139   :  { %v5114_v43 = vpop.f32.mrb[9].mxu1  ;;  %v5095_v44 = vpop.f32.mrb[11].mxu0  ;;  %5395 = vmatprep.subr.bf16.mxu0 %v5952_v32 }
 0x13a   :  { %v3646_v45 = vadd.f32 %v5093_v38, %v7024_v1  ;;  %v5115_v46 = vadd.f32 %v5114_v43, %v5113_v37  ;;  %v5116_v47 = vpop.f32.mrb[10].mxu1  ;;  %5416 = vmatpush3.bf16.msra.mxu1 %v5951_v31  ;;  %v5971_v1 = vld [vmem:[%s7430_s1 + $0xa10] sm:$0xff]   ;;  %v7231_v37 = vrot.slane %v1050_v25, %v6194_v41  ;;  %v5992_v44 = vld [vmem:[%s7430_s1 + $0xab8] sm:$0xff]  }
 0x13b   :  { %v5117_v49 = vpop.f32.mrb[11].mxu1  ;;  %5417 = vmatprep.subr.bf16.mxu1 %v5953_v34  ;;  %v1065_v34 = vcombine.high %v1057_v24, %v1057_v24 }
 0x13c   :  { %v7125_v51 = vadd.f32 %v5115_v46, %v3646_v45  ;;  %5396 = vmatpush3.bf16.msra.mxu0 %v5954_v36  ;;  %v5991_v36 = vld [vmem:[%s7430_s1 + $0xa38] sm:$0xff]   ;;  %v1066_v43 = vcombine.high %v7231_v37, %v7231_v37  ;;  %v5994_v46 = vld [vmem:[%s7430_s1 + $0xbc0] sm:$0xff]  }
 0x13d   :  { %5397 = vmatprep.subr.bf16.mxu0 %v5956_v42  ;;  %v1087_v39 = vrot.slane %v1065_v34, %v6194_v41  ;;  %v5993_v42 = vld [vmem:[%s7430_s1 + $0xb40] sm:$0xff]  }
 0x13e   :  { %5418 = vmatpush3.bf16.msra.mxu1 %v5955_v40  ;;  %v1073_v40 = vrot.slane %v1057_v24, %v6194_v41  ;;  %v1094_v47 = vrot.slane %v1066_v43, %v6194_v41 }
 0x13f   :  { %5419 = vmatprep.subr.bf16.mxu1 %v5957_v48  ;;  %v1097_v45 = vcombine.high %v1087_v39, %v1087_v39  ;;  %v5995_v48 = vld [vmem:[%s7430_s1 + $0xb00] sm:$0xff]  }
 0x140   :  { %5398 = vmatpush3.bf16.msra.mxu0 %v5958_v50  ;;  %v1095_v49 = vcombine.high %v1073_v40, %v1073_v40  ;;  %v5997_v50 = vld [vmem:[%s7430_s1 + $0xb48] sm:$0xff]  }
 0x141   :  { %5427 = vmatprep.subr.bf16.mxu0 %v5961_v54  ;;  %v5999_v54 = vld [vmem:[%s7430_s1 + $0xb08] sm:$0xff]  }
 0x142   :  { %5420 = vmatpush3.bf16.msra.mxu1 %v5959_v52  ;;  %v1098_v52 = vcombine.high %v1094_v47, %v1094_v47 }
 0x143   :  { %4204 = vmatmul.mubr.bf16.vlgmr.msra.gmra.mrb[36].mxu0 %v1031_v53  ;;  %5449 = vmatprep.subr.bf16.mxu1 %v5962_v55  ;;  %v5998_v53 = vld [vmem:[%s7430_s1 + $0xbc8] sm:$0xff]   ;;  %v6001_v55 = vld [vmem:[%s7430_s1 + $0xb50] sm:$0xff]  }
 0x144   :  { %5428 = vmatpush3.bf16.msra.mxu0 %v5963_v57  ;;  %4283 = vmatprep.mubr.bf16.mxu0 %v1087_v39  ;;  %v6000_v57 = vld [vmem:[%s7430_s1 + $0xb88] sm:$0xff]  }
 0x145   :  { %4244 = vmatmul.mubr.bf16.vlgmr.msra.gmra.mrb[36].mxu1 %v1047_v56  ;;  %5429 = vmatprep.subr.bf16.mxu0 %v5965_v59  ;;  %v6003_v56 = vld [vmem:[%s7430_s1 + $0xb10] sm:$0xff]   ;;  %v6005_v59 = vld [vmem:[%s7430_s1 + $0xb58] sm:$0xff]  }
 0x146   :  { %5450 = vmatpush3.bf16.msra.mxu1 %v5964_v58  ;;  %4323 = vmatprep.mubr.bf16.mxu1 %v1097_v45  ;;  %v6002_v58 = vld [vmem:[%s7430_s1 + $0xbd0] sm:$0xff]  }
 0x147   :  { %5451 = vmatprep.subr.bf16.mxu1 %v5966_v60  ;;  %v6004_v60 = vld [vmem:[%s7430_s1 + $0xb90] sm:$0xff]  }
 0x148   :  { %5430 = vmatpush3.bf16.msra.mxu0 %v5967_v61  ;;  %v6006_v61 = vld [vmem:[%s7430_s1 + $0xbd8] sm:$0xff]  }
 0x149   :  { %5431 = vmatprep.subr.bf16.mxu0 %v5969_v63  ;;  %v6009_v63 = vld [vmem:[%s7430_s1 + $0xb60] sm:$0xff]  }
 0x14a   :  { %5452 = vmatpush3.bf16.msra.mxu1 %v5968_v62  ;;  %v6007_v62 = vld [vmem:[%s7430_s1 + $0xb18] sm:$0xff]  }
 0x14b   :  { %5453 = vmatprep.subr.bf16.mxu1 %v5970_v0  ;;  %v6008_v0 = vld [vmem:[%s7430_s1 + $0xb98] sm:$0xff]  }
 0x14c   :  { %5432 = vmatpush3.bf16.msra.mxu0 %v5971_v1  ;;  %v6010_v1 = vld [vmem:[%s7430_s1 + $0xbe0] sm:$0xff]  }
 0x14d   :  { %5433 = vmatprep.subr.bf16.mxu0 %v5973_v3  ;;  %v6013_v3 = vld [vmem:[%s7430_s1 + $0xb68] sm:$0xff]  }
 0x14e   :  { %5454 = vmatpush3.bf16.msra.mxu1 %v5972_v2  ;;  %v6011_v2 = vld [vmem:[%s7430_s1 + $0xb20] sm:$0xff]  }
 0x14f   :  { %5455 = vmatprep.subr.bf16.mxu1 %v5974_v4  ;;  %v6012_v4 = vld [vmem:[%s7430_s1 + $0xba0] sm:$0xff]  }
 0x150   :  { %5434 = vmatpush3.bf16.msra.mxu0 %v5975_v5  ;;  %v6014_v5 = vld [vmem:[%s7430_s1 + $0xbe8] sm:$0xff]  }
 0x151   :  { %5435 = vmatprep.subr.bf16.mxu0 %v5977_v7  ;;  %v6017_v7 = vld [vmem:[%s7430_s1 + $0xb70] sm:$0xff]  }
 0x152   :  { %5456 = vmatpush3.bf16.msra.mxu1 %v5976_v6  ;;  %v6015_v6 = vld [vmem:[%s7430_s1 + $0xb28] sm:$0xff]  }
 0x153   :  { %5457 = vmatprep.subr.bf16.mxu1 %v5978_v8 }
 0x154   :  { %5436 = vmatpush3.bf16.msra.mxu0 %v5979_v9  ;;  %v6016_v9 = vld [vmem:[%s7430_s1 + $0xba8] sm:$0xff]  }
 0x155   :  { %5437 = vmatprep.subr.bf16.mxu0 %v5981_v11  ;;  %v6018_v11 = vld [vmem:[%s7430_s1 + $0xbf0] sm:$0xff]  }
 0x156   :  { %5458 = vmatpush3.bf16.msra.mxu1 %v5980_v10  ;;  %v5135_v16 = vpop.f32.mrb[12].mxu0 }
 0x157   :  { %v5136_v18 = vpop.f32.mrb[13].mxu0  ;;  %5459 = vmatprep.subr.bf16.mxu1 %v5982_v12 }
 0x158   :  { %v5157_v21 = vpop.f32.mrb[12].mxu1  ;;  %v5137_v22 = vadd.f32 %v5136_v18, %v5135_v16  ;;  %v5138_v23 = vpop.f32.mrb[14].mxu0  ;;  %5438 = vmatpush3.bf16.msra.mxu0 %v5983_v13 }
 0x159   :  { %v5158_v26 = vpop.f32.mrb[13].mxu1  ;;  %v5139_v27 = vpop.f32.mrb[15].mxu0  ;;  %5439 = vmatprep.subr.bf16.mxu0 %v5985_v15  ;;  %v6019_v15 = vld [vmem:[%s7430_s1 + $0xb30] sm:$0xff]  }
 0x15a   :  { %v3726_v30 = vadd.f32 %v5137_v22, %v7125_v51  ;;  %v5159_v31 = vadd.f32 %v5158_v26, %v5157_v21  ;;  %v5160_v32 = vpop.f32.mrb[14].mxu1  ;;  %5460 = vmatpush3.bf16.msra.mxu1 %v5984_v14  ;;  %v5996_v51 = vld [vmem:[%s7430_s1 + $0xb80] sm:$0xff]  }
 0x15b   :  { %v5161_v35 = vpop.f32.mrb[15].mxu1  ;;  %5461 = vmatprep.subr.bf16.mxu1 %v5986_v17 }
 0x15c   :  { %v7233_v38 = vadd.f32 %v5159_v31, %v3726_v30  ;;  %5440 = vmatpush3.bf16.msra.mxu0 %v5987_v19 }
 0x15d   :  { %5441 = vmatprep.subr.bf16.mxu0 %v5989_v29 }
 0x15e   :  { %5462 = vmatpush3.bf16.msra.mxu1 %v5988_v28 }
 0x15f   :  { %5463 = vmatprep.subr.bf16.mxu1 %v5990_v33 }
 0x160   :  { %5442 = vmatpush3.bf16.msra.mxu0 %v5991_v36 }
 0x161   :  { %5471 = vmatprep.subr.bf16.mxu0 %v5993_v42 }
 0x162   :  { %5464 = vmatpush3.bf16.msra.mxu1 %v5992_v44 }
 0x163   :  { %4284 = vmatmul.mubr.bf16.vlgmr.msra.gmra.mrb[40].mxu0 %v1073_v40  ;;  %5493 = vmatprep.subr.bf16.mxu1 %v5994_v46 }
 0x164   :  { %5472 = vmatpush3.bf16.msra.mxu0 %v5995_v48  ;;  %4363 = vmatprep.mubr.bf16.mxu0 %v1094_v47 }
 0x165   :  { %4324 = vmatmul.mubr.bf16.vlgmr.msra.gmra.mrb[40].mxu1 %v1095_v49  ;;  %5473 = vmatprep.subr.bf16.mxu0 %v5997_v50 }
 0x166   :  { %5494 = vmatpush3.bf16.msra.mxu1 %v5996_v51  ;;  %4403 = vmatprep.mubr.bf16.mxu1 %v1098_v52 }
 0x167   :  { %5495 = vmatprep.subr.bf16.mxu1 %v5998_v53 }
 0x168   :  { %5474 = vmatpush3.bf16.msra.mxu0 %v5999_v54 }
 0x169   :  { %5475 = vmatprep.subr.bf16.mxu0 %v6001_v55 }
 0x16a   :  { %5496 = vmatpush3.bf16.msra.mxu1 %v6000_v57 }
 0x16b   :  { %5497 = vmatprep.subr.bf16.mxu1 %v6002_v58 }
 0x16c   :  { %5476 = vmatpush3.bf16.msra.mxu0 %v6003_v56 }
 0x16d   :  { %5477 = vmatprep.subr.bf16.mxu0 %v6005_v59 }
 0x16e   :  { %5498 = vmatpush3.bf16.msra.mxu1 %v6004_v60 }
 0x16f   :  { %5499 = vmatprep.subr.bf16.mxu1 %v6006_v61 }
 0x170   :  { %5478 = vmatpush3.bf16.msra.mxu0 %v6007_v62 }
 0x171   :  { %5479 = vmatprep.subr.bf16.mxu0 %v6009_v63 }
 0x172   :  { %5500 = vmatpush3.bf16.msra.mxu1 %v6008_v0 }
 0x173   :  { %5501 = vmatprep.subr.bf16.mxu1 %v6010_v1 }
 0x174   :  { %5480 = vmatpush3.bf16.msra.mxu0 %v6011_v2 }
 0x175   :  { %5481 = vmatprep.subr.bf16.mxu0 %v6013_v3 }
 0x176   :  { %5502 = vmatpush3.bf16.msra.mxu1 %v6012_v4  ;;  %v5179_v8 = vpop.f32.mrb[16].mxu0 }
 0x177   :  { %v5180_v10 = vpop.f32.mrb[17].mxu0  ;;  %5503 = vmatprep.subr.bf16.mxu1 %v6014_v5 }
 0x178   :  { %v5201_v12 = vpop.f32.mrb[16].mxu1  ;;  %v5181_v13 = vadd.f32 %v5180_v10, %v5179_v8  ;;  %v5182_v14 = vpop.f32.mrb[18].mxu0  ;;  %5482 = vmatpush3.bf16.msra.mxu0 %v6015_v6 }
 0x179   :  { %11 = vsyncpa [#allocation4], 0  ;;  %v5202_v16 = vpop.f32.mrb[17].mxu1  ;;  %v5183_v17 = vpop.f32.mrb[19].mxu0  ;;  %5483 = vmatprep.subr.bf16.mxu0 %v6017_v7  ;;  %v6021_v18 = vld [vmem:[%s7430_s1 + $0xb78] sm:$0xff]   ;;  %v6020_v22 = vld [vmem:[%s7430_s1 + $0xbb0] sm:$0xff]   ;;  %v1080_v27 = vrot.slane %v7231_v37, %v6194_v41 }
 0x17a   :  { %v3806_v19 = vadd.f32 %v5181_v13, %v7233_v38  ;;  %v5203_v20 = vadd.f32 %v5202_v16, %v5201_v12  ;;  %v5204_v21 = vpop.f32.mrb[18].mxu1  ;;  %5504 = vmatpush3.bf16.msra.mxu1 %v6016_v9  ;;  %v6022_v24 = vld [vmem:[%s7430_s1 + $0xbf8] sm:$0xff]   ;;  %v4416_v2 = vld [vmem:[%s7431_s2] sm:$0xff]  ;;  %v4417_v3 = vld [vmem:[%s7431_s2 + $0x8] sm:$0xff]  ;;  %v6055_v7 = vmov 0.0|0.0   ;;  %vm6056_vm0 = vmmov 0  }
 0x17b   :  { %v5205_v23 = vpop.f32.mrb[19].mxu1  ;;  %5505 = vmatprep.subr.bf16.mxu1 %v6018_v11  ;;  %v6023_v26 = vld [vmem:[%s7430_s1 + $0xb38] sm:$0xff]   ;;  %v1096_v29 = vcombine.high %v1080_v27, %v1080_v27  ;;  %v4502_v4 = vld [vmem:[%s7432_s3] sm:$0xff]  ;;  %v5596_v5 = vpack.c.bf16 %v4417_v3, %v4416_v2  ;;  %v4503_v6 = vld [vmem:[%s7432_s3 + $0x8] sm:$0xff]  ;;  %vm4428_vm1 = vcmask 785408   ;;  %vm4585_vm2 = vcmask 287744  }
 0x17c   :  { %v3846_v25 = vadd.f32 %v5203_v20, %v3806_v19  ;;  %5484 = vmatpush3.bf16.msra.mxu0 %v6019_v15  ;;  %v6024_v28 = vld [vmem:[%s7430_s1 + $0xbb8] sm:$0xff]   ;;  %v5614_v8 = vpack.c.bf16 %v4503_v6, %v4502_v4  ;;  %v4418_v9 = vld [vmem:[%s7431_s2 + $0x10] sm:$0xff]  ;;  %v4420_v15 = vld [vmem:[%s7431_s2 + $0x20] sm:$0xff] }
 0x17d   :  { %5485 = vmatprep.subr.bf16.mxu0 %v6021_v18  ;;  %v4419_v10 = vld [vmem:[%s7431_s2 + $0x18] sm:$0xff]  ;;  %v4504_v11 = vld [vmem:[%s7432_s3 + $0x10] sm:$0xff]  ;;  %v4421_v16 = vld [vmem:[%s7431_s2 + $0x28] sm:$0xff] }
 0x17e   :  { %5506 = vmatpush3.bf16.msra.mxu1 %v6020_v22  ;;  %v5599_v12 = vpack.c.bf16 %v4419_v10, %v4418_v9  ;;  %v4505_v13 = vld [vmem:[%s7432_s3 + $0x18] sm:$0xff]  ;;  %v4506_v17 = vld [vmem:[%s7432_s3 + $0x20] sm:$0xff]  ;;  %v5602_v18 = vpack.c.bf16 %v4421_v16, %v4420_v15  ;;  %v4507_v19 = vld [vmem:[%s7432_s3 + $0x28] sm:$0xff] }
 0x17f   :  { %5507 = vmatprep.subr.bf16.mxu1 %v6022_v24  ;;  %v5617_v14 = vpack.c.bf16 %v4505_v13, %v4504_v11  ;;  %v5620_v20 = vpack.c.bf16 %v4507_v19, %v4506_v17  ;;  %v4422_v21 = vld [vmem:[%s7431_s2 + $0x30] sm:$0xff]  ;;  %v4423_v22 = vld [vmem:[%s7431_s2 + $0x38] sm:$0xff] }
 0x180   :  { %5486 = vmatpush3.bf16.msra.mxu0 %v6023_v26  ;;  %v4508_v23 = vld [vmem:[%s7432_s3 + $0x30] sm:$0xff]  ;;  %v5605_v24 = vpack.c.bf16 %v4423_v22, %v4422_v21  ;;  %v4424_v26 = vld [vmem:[%s7431_s2 + $0x40] sm:$0xff] }
 0x181   :  { %5595 = vmatprep.subr.bf16.mxu0 %v6055_v7 }
 0x182   :  { %5508 = vmatpush3.bf16.msra.mxu1 %v6024_v28 }
 0x183   :  { %4364 = vmatmul.mubr.bf16.vlgmr.msra.gmra.mrb[44].mxu0 %v1080_v27  ;;  %5613 = vmatprep.subr.bf16.mxu1 %v6055_v7  ;;  %v4425_v27 = vld [vmem:[%s7431_s2 + $0x48] sm:$0xff] }
 0x184   :  { %5597 = vmatpush3.bf16.msra.mxu0 %v5596_v5 }
 0x185   :  { %4404 = vmatmul.mubr.bf16.vlgmr.msra.gmra.mrb[44].mxu1 %v1096_v29  ;;  %5598 = vmatprep.subr.bf16.mxu0 %v6055_v7  ;;  %v4510_v29 = vld [vmem:[%s7432_s3 + $0x40] sm:$0xff] }
 0x186   :  { %5615 = vmatpush3.bf16.msra.mxu1 %v5614_v8 }
 0x187   :  { %5616 = vmatprep.subr.bf16.mxu1 %v6055_v7 }
 0x188   :  { %5600 = vmatpush3.bf16.msra.mxu0 %v5599_v12 }
 0x189   :  { %5601 = vmatprep.subr.bf16.mxu0 %v6055_v7 }
 0x18a   :  { %5618 = vmatpush3.bf16.msra.mxu1 %v5617_v14 }
 0x18b   :  { %5619 = vmatprep.subr.bf16.mxu1 %v6055_v7 }
 0x18c   :  { %5603 = vmatpush3.bf16.msra.mxu0 %v5602_v18 }
 0x18d   :  { %5604 = vmatprep.subr.bf16.mxu0 %v6055_v7 }
 0x18e   :  { %5621 = vmatpush3.bf16.msra.mxu1 %v5620_v20 }
 0x18f   :  { %5622 = vmatprep.subr.bf16.mxu1 %v6055_v7 }
 0x190   :  { %5606 = vmatpush3.bf16.msra.mxu0 %v5605_v24 }
 0x191   :  { %5607 = vmatprep.subr.bf16.mxu0 %v6055_v7 }
 0x196   :  { %v5223_v30 = vpop.f32.mrb[20].mxu0 }
 0x197   :  { %v5224_v31 = vpop.f32.mrb[21].mxu0 }
 0x198   :  { %v5245_v32 = vpop.f32.mrb[20].mxu1  ;;  %v5225_v33 = vadd.f32 %v5224_v31, %v5223_v30  ;;  %v5226_v34 = vpop.f32.mrb[22].mxu0  ;;  %v4511_v30 = vld [vmem:[%s7432_s3 + $0x48] sm:$0xff]  ;;  %v6057_v31 = vmov 0.0  }
 0x199   :  { %v5246_v35 = vpop.f32.mrb[21].mxu1  ;;  %v5227_v36 = vpop.f32.mrb[23].mxu0  ;;  %5565 = vmatprep.mubr.msk.f32.mxu0 %vm6056_vm0, %v6057_v31  ;;  %5592 = vmatprep.mubr.msk.f32.mxu1 %vm6056_vm0, %v6057_v31  ;;  %v4426_v34 = vld [vmem:[%s7431_s2 + $0x50] sm:$0xff] }
 0x19a   :  { %v3886_v38 = vadd.f32 %v5225_v33, %v3846_v25  ;;  %v5247_v41 = vadd.f32 %v5246_v35, %v5245_v32  ;;  %v5248_v37 = vpop.f32.mrb[22].mxu1  ;;  %v4509_v25 = vld [vmem:[%s7432_s3 + $0x38] sm:$0xff]  ;;  %v5608_v32 = vpack.c.bf16 %v4425_v27, %v4424_v26  ;;  %v5626_v33 = vpack.c.bf16 %v4511_v30, %v4510_v29  ;;  %v4512_v36 = vld [vmem:[%s7432_s3 + $0x50] sm:$0xff] }
 0x19b   :  { %v5249_v39 = vpop.f32.mrb[23].mxu1  ;;  %v5623_v28 = vpack.c.bf16 %v4509_v25, %v4508_v23  ;;  %v4427_v35 = vld [vmem:[%s7431_s2 + $0x58] sm:$0xff]  ;;  %s6058_s2 = smov [#allocation3]  }
 0x19c   :  { %v3926_v40 = vadd.f32 %v5247_v41, %v3886_v38  ;;  %v4513_v38 = vld [vmem:[%s7432_s3 + $0x58] sm:$0xff]  ;;  %5609 = vmatpush3.bf16.msra.mxu0 %v5608_v32  ;;  %v5611_v41 = vpack.c.bf16 %v4427_v35, %v4426_v34  ;;  %s4593_s3 = sshll.u32 %s6058_s2, 4  ;;  %s4594_s3 = int_to_ptr.vmem [resolvable:$true] %s4593_s3 }
 0x19d   :  { %5624 = vmatpush3.bf16.msra.mxu1 %v5623_v28  ;;  %5610 = vmatprep.subr.bf16.mxu0 %v6055_v7  ;;  %v5629_v39 = vpack.c.bf16 %v4513_v38, %v4512_v36  ;;  %s6030_s29 = scalar_lea.vmem %s4594_s3, 32  ;;  %p6035_p1 = scmp.lt.s32.totalorder %s4594_s3, %s4594_s3 }
 0x19e   :  { %5625 = vmatprep.subr.bf16.mxu1 %v6055_v7  ;;  %p6031_p0 = scmp.ne.s32.totalorder %s4594_s3, %s6030_s29  ;;  %p6036_p2 = scmp.lt.s32.totalorder %s6030_s29, %s6030_s29 }
 0x1a0   :  { %5612 = vmatpush3.bf16.msra.mxu0 %v5611_v41  ;;  %p6037_p3 = por %p6036_p2, %p6035_p1 }
 0x1a1   :  { %5627 = vmatpush3.bf16.msra.mxu1 %v5626_v33 }
 0x1a2   :  { %5628 = vmatprep.subr.bf16.mxu1 %v6055_v7  ;;  %p6038_p4 = pnand %p6037_p3, %p6031_p0 }
 0x1a5   :  { %5630 = vmatpush3.bf16.msra.mxu1 %v5629_v39 }
 0x1b6   :  { %v5267_v42 = vpop.f32.mrb[24].mxu0 }
 0x1b7   :  { %v5268_v43 = vpop.f32.mrb[25].mxu0 }
 0x1b8   :  { %v5289_v44 = vpop.f32.mrb[24].mxu1  ;;  %v5269_v45 = vadd.f32 %v5268_v43, %v5267_v42  ;;  %v5270_v46 = vpop.f32.mrb[26].mxu0 }
 0x1b9   :  { %v5290_v47 = vpop.f32.mrb[25].mxu1  ;;  %v5271_v48 = vpop.f32.mrb[27].mxu0 }
 0x1ba   :  { %v3966_v49 = vadd.f32 %v5269_v45, %v3926_v40  ;;  %v5291_v50 = vadd.f32 %v5290_v47, %v5289_v44  ;;  %v5292_v51 = vpop.f32.mrb[26].mxu1 }
 0x1bb   :  { %v5293_v52 = vpop.f32.mrb[27].mxu1 }
 0x1bc   :  { %v4006_v53 = vadd.f32 %v5291_v50, %v3966_v49 }
 0x1d6   :  { %v5311_v54 = vpop.f32.mrb[28].mxu0 }
 0x1d7   :  { %v5312_v55 = vpop.f32.mrb[29].mxu0 }
 0x1d8   :  { %v5333_v57 = vpop.f32.mrb[28].mxu1  ;;  %v5313_v58 = vadd.f32 %v5312_v55, %v5311_v54  ;;  %v5314_v56 = vpop.f32.mrb[30].mxu0 }
 0x1d9   :  { %v5334_v59 = vpop.f32.mrb[29].mxu1  ;;  %v5315_v60 = vpop.f32.mrb[31].mxu0 }
 0x1da   :  { %v4046_v61 = vadd.f32 %v5313_v58, %v4006_v53  ;;  %v5335_v62 = vadd.f32 %v5334_v59, %v5333_v57  ;;  %v5336_v63 = vpop.f32.mrb[30].mxu1 }
 0x1db   :  { %v5337_v0 = vpop.f32.mrb[31].mxu1 }
 0x1dc   :  { %v7342_v1 = vadd.f32 %v5335_v62, %v4046_v61 }
 0x1f6   :  { %v5355_v37 = vpop.f32.mrb[32].mxu0 }
 0x1f7   :  { %v5356_v40 = vpop.f32.mrb[33].mxu0 }
 0x1f8   :  { %v5377_v42 = vpop.f32.mrb[32].mxu1  ;;  %v5357_v43 = vadd.f32 %v5356_v40, %v5355_v37  ;;  %v5358_v44 = vpop.f32.mrb[34].mxu0 }
 0x1f9   :  { %v5378_v45 = vpop.f32.mrb[33].mxu1  ;;  %v5359_v46 = vpop.f32.mrb[35].mxu0 }
 0x1fa   :  { %v4126_v47 = vadd.f32 %v5357_v43, %v7342_v1  ;;  %v5379_v48 = vadd.f32 %v5378_v45, %v5377_v42  ;;  %v5380_v49 = vpop.f32.mrb[34].mxu1 }
 0x1fb   :  { %v5381_v50 = vpop.f32.mrb[35].mxu1 }
 0x1fc   :  { %v4166_v51 = vadd.f32 %v5379_v48, %v4126_v47 }
 0x216   :  { %v5399_v52 = vpop.f32.mrb[36].mxu0 }
 0x217   :  { %v5400_v53 = vpop.f32.mrb[37].mxu0 }
 0x218   :  { %v5421_v54 = vpop.f32.mrb[36].mxu1  ;;  %v5401_v55 = vadd.f32 %v5400_v53, %v5399_v52  ;;  %v5402_v57 = vpop.f32.mrb[38].mxu0 }
 0x219   :  { %v5422_v58 = vpop.f32.mrb[37].mxu1  ;;  %v5403_v56 = vpop.f32.mrb[39].mxu0 }
 0x21a   :  { %v4206_v59 = vadd.f32 %v5401_v55, %v4166_v51  ;;  %v5423_v60 = vadd.f32 %v5422_v58, %v5421_v54  ;;  %v5424_v61 = vpop.f32.mrb[38].mxu1 }
 0x21b   :  { %v5425_v62 = vpop.f32.mrb[39].mxu1 }
 0x21c   :  { %v4246_v63 = vadd.f32 %v5423_v60, %v4206_v59 }
 0x236   :  { %v5443_v0 = vpop.f32.mrb[40].mxu0 }
 0x237   :  { %v5444_v2 = vpop.f32.mrb[41].mxu0 }
 0x238   :  { %v5465_v1 = vpop.f32.mrb[40].mxu1  ;;  %v5445_v3 = vadd.f32 %v5444_v2, %v5443_v0  ;;  %v5446_v4 = vpop.f32.mrb[42].mxu0 }
 0x239   :  { %v5466_v5 = vpop.f32.mrb[41].mxu1  ;;  %v5447_v6 = vpop.f32.mrb[43].mxu0 }
 0x23a   :  { %v4286_v7 = vadd.f32 %v5445_v3, %v4246_v63  ;;  %v5467_v8 = vadd.f32 %v5466_v5, %v5465_v1  ;;  %v5468_v9 = vpop.f32.mrb[42].mxu1 }
 0x23b   :  { %v5469_v10 = vpop.f32.mrb[43].mxu1 }
 0x23c   :  { %v4326_v11 = vadd.f32 %v5467_v8, %v4286_v7 }
 0x256   :  { %v5487_v12 = vpop.f32.mrb[44].mxu0 }
 0x257   :  { %v5488_v13 = vpop.f32.mrb[45].mxu0 }
 0x258   :  { %v5509_v14 = vpop.f32.mrb[44].mxu1  ;;  %v5489_v15 = vadd.f32 %v5488_v13, %v5487_v12  ;;  %v5490_v16 = vpop.f32.mrb[46].mxu0 }
 0x259   :  { %v5510_v17 = vpop.f32.mrb[45].mxu1  ;;  %v5491_v18 = vpop.f32.mrb[47].mxu0 }
 0x25a   :  { %v4366_v19 = vadd.f32 %v5489_v15, %v4326_v11  ;;  %v5511_v20 = vadd.f32 %v5510_v17, %v5509_v14  ;;  %v5512_v21 = vpop.f32.mrb[46].mxu1 }
 0x25b   :  { %v5513_v22 = vpop.f32.mrb[47].mxu1 }
 0x25c   :  { %v4406_v23 = vadd.f32 %v5511_v20, %v4366_v19 }
 0x25e   :  { %v4411_v24 = vsub.f32 0.0, %v4406_v23 }
 0x260   :  { %v4412_v25 = vmul.f32 1.442695, %v4411_v24 }
 0x262   :  { %6026 = vpow2.f32 %v4412_v25 }
 0x26c   :  { %v6027_v26 = vpop.eup %6026 }
 0x26d   :  { %v4414_v27 = vadd.f32 1.0, %v6027_v26 }
 0x26f   :  { %6028 = vrcp.f32 %v4414_v27 }
 0x279   :  { %v6029_v28 = vpop.eup %6028 }
 0x27a   :  { %5566 = vmatmul.mubr.msk.f32.vlgmr.msra.gmra.mrb[48].mxu0 %vm4428_vm1, %v6029_v28  ;;  %5593 = vmatmul.mubr.msk.f32.vlgmr.msra.gmra.mrb[48].mxu1 %vm4428_vm1, %v6029_v28 }
 0x34d   :  { %v4498_v29 = vpop.f32.mrb[48].mxu0  ;;  %v4580_v30 = vpop.f32.mrb[48].mxu1 }
 0x34e   :  { %v4584_v31 = vmul.f32 %v4580_v30, %v4498_v29  ;;  %v5567_v32 = vpop.f32.mrb[49].mxu0  ;;  %v5594_v33 = vpop.f32.mrb[49].mxu1 }
 0x350   :  { %4586 = vst.msk [vmem:[#allocation3] sm:$0x3] %vm4585_vm2, %v4584_v31 }
 0x351   :  { %6041 = shalt.err (!%p6038_p4)
}
 0x352   :  { %s6042_s7 = scalar_lea.hbm %s7434_s5, 32 }
 0x353   :  { %p6043_p5 = scmp.ne.s32.totalorder %s7434_s5, %s6042_s7  ;;  %p6046_p6 = scmp.lt.u32.totalorder %s6042_s7, %s7434_s5 }
 0x355   :  { %p6048_p7 = pnand %p6046_p6, %p6043_p5 }
 0x357   :  { %6051 = shalt.err (!%p6048_p7)
}
 0x358   :  { %4596 = dma.vmem_to_hbm [thread:$0]  %s4594_s3, 32, %s7434_s5, [#allocation4]  }
 0x359   :  { %6052 = dma.done.wait [#allocation4], 32  }
 0x35a   :  { %6053 = vsyncadd [#allocation4], 4294967264 }
 0x35b   :  { %4600 = vsyncpa [#allocation4], 1 }

</bundles_post_ra>
